<compile_context>
chip_gen: v5e
topology: v5e:2x2
jax: 0.10.0
libtpu: 0.0.40
codegen_flags: <defaults>
</compile_context>

<pallas_src>
import jax
import jax.numpy as jnp
from jax import lax
from jax.experimental import pallas as pl
from jax.experimental.pallas import tpu as pltpu


def link_pred_kernel(a_ref, bt_ref, w2_ref, b2_ref, out_ref):
    # a_ref:  (TI, E)  VMEM  -- z_i-side pre-activations A = z @ W1[:E]      (varies with grid i)
    # bt_ref: (E, TJ)  VMEM  -- z_j-side pre-activations (+b1), transposed   (varies with grid j)
    # w2_ref: (E,)     SMEM  -- second-layer weights, read as scalars
    # b2_ref: (1,)     SMEM  -- scalar bias, folded into the accumulator init
    # out_ref: (TI, TJ) VMEM
    ti, e_dim = a_ref.shape
    tj = bt_ref.shape[1]
    b2 = b2_ref[0]

    strip = 8                              # one sublane strip of the output tile
    n_strips = ti // strip

    def strip_body(s, carry):
        i0 = pl.multiple_of(s * strip, strip)
        a_strip = a_ref[pl.ds(i0, strip), :]               # (8, E)  -- one vreg
        # Accumulator stays a loop-carried value (vreg-resident), initialized with b2.
        acc = jnp.full((strip, tj), b2, jnp.float32)
        for e in range(e_dim):                             # static unroll over E
            col = a_strip[:, e:e + 1]                      # (8, 1)  -> lane broadcast
            row = bt_ref[e:e + 1, :]                       # (1, TJ) -> sublane broadcast
            acc = acc + jnp.maximum(col + row, 0.0) * w2_ref[e]
        out_ref[pl.ds(i0, strip), :] = acc                 # single lane-dense store per strip
        return carry

    lax.fori_loop(0, n_strips, strip_body, 0)


def _round_up(x, m):
    return ((x + m - 1) // m) * m


def link_predictor_qvalues(z, w1, b1, w2, b2, *, tile_i=512, tile_j=512):
    """z: (N, E) f32.  w1: (2E, E), b1: (E,), w2: (E,), b2: ().  Returns (N*N,) q-values."""
    N, E = z.shape
    z32 = z.astype(jnp.float32)
    w1a = w1[:E, :].astype(jnp.float32)     # multiplies z_i
    w1b = w1[E:, :].astype(jnp.float32)     # multiplies z_j
    b1f = b1.astype(jnp.float32)

    # Lane-dense tiling: both pair-tile dims are multiples of 128, clamped to the problem.
    n128 = _round_up(N, 128)
    tile_i = min(tile_i, n128)
    tile_j = min(tile_j, n128)
    # v7x megacore: avoid a degenerate (1,1) grid when there is enough work to split.
    if (n128 // tile_i) == 1 and (n128 // tile_j) == 1 and n128 >= 256:
        tile_i = _round_up(n128 // 2, 128)
    n_i = _round_up(N, tile_i)
    n_j = _round_up(N, tile_j)

    # Pad z once on the node axis; padded rows/cols of the output are sliced away below.
    n_max = max(n_i, n_j)
    z_pad = jnp.zeros((n_max, E), jnp.float32).at[:N].set(z32)

    # Hoisted projections: one full-height GEMM per side.
    #   A  = z @ W1[:E]                 (n_i, E)   -- consumed untransposed
    #   Bt = W1[E:]^T @ z^T + b1        (E,  n_j)  -- transpose fused into the GEMM
    a = z_pad[:n_i] @ w1a
    b_t = w1b.T @ z_pad[:n_j].T + b1f[:, None]

    w2_flat = w2.reshape(E).astype(jnp.float32)
    b2_s = jnp.asarray(b2, jnp.float32).reshape(1)

    grid = (n_i // tile_i, n_j // tile_j)

    # Tight, computed VMEM budget: double-buffered input/output blocks plus headroom.
    # Capped at 48 MiB so the same config is valid on v7x's 64 MiB per-TC VMEM.
    block_bytes = 4 * (tile_i * E + E * tile_j + tile_i * tile_j)
    vmem_limit = int(min(48 * 1024 * 1024, max(8 * 1024 * 1024, 4 * block_bytes)))

    q_pad = pl.pallas_call(
        link_pred_kernel,
        out_shape=jax.ShapeDtypeStruct((n_i, n_j), jnp.float32),
        grid_spec=pltpu.PrefetchScalarGridSpec(
            num_scalar_prefetch=0,
            grid=grid,
            in_specs=[
                pl.BlockSpec((tile_i, E), lambda i, j: (i, 0)),     # A tile (constant over j)
                pl.BlockSpec((E, tile_j), lambda i, j: (0, j)),     # B^T tile (constant over i)
                pl.BlockSpec(memory_space=pltpu.MemorySpace.SMEM),  # w2 scalars
                pl.BlockSpec(memory_space=pltpu.MemorySpace.SMEM),  # b2 scalar
            ],
            out_specs=pl.BlockSpec((tile_i, tile_j), lambda i, j: (i, j)),
        ),
        compiler_params=pltpu.CompilerParams(
            dimension_semantics=("parallel", "parallel"),
            vmem_limit_bytes=vmem_limit,
        ),
    )(a, b_t, w2_flat, b2_s)

    # Row-major flatten of the (N, N) q-matrix matches repeat_interleave / repeat ordering.
    # When N % 128 == 0 and tiles divide N, the slice is a no-op.
    return q_pad[:N, :N].reshape(N * N)


def reference_qvalues(z, w1, b1, w2, b2):
    """Pure-JAX reference matching the PyTorch forward exactly."""
    N, E = z.shape
    z_i = jnp.repeat(z, N, axis=0)           # repeat_interleave(N, dim=0)
    z_j = jnp.tile(z, (N, 1))                # repeat(N, 1)
    x = jnp.concatenate([z_i, z_j], axis=1)  # (N*N, 2E)
    h = jnp.maximum(x @ w1 + b1, 0.0)
    q = h @ w2 + b2
    return q.reshape(-1)


if __name__ == "__main__":
    num_nodes = 256
    embedding_size = 32

    key = jax.random.PRNGKey(0)
    k_z, k_w1, k_b1, k_w2, k_b2 = jax.random.split(key, 5)

    # Deterministic synthetic parameters (shapes match
    # Linear(2E, E) -> ReLU -> Linear(E, 1); stored pre-transposed: y = x @ W + b).
    z = jax.random.normal(k_z, (num_nodes, embedding_size), dtype=jnp.float32)
    w1 = jax.random.normal(k_w1, (2 * embedding_size, embedding_size), dtype=jnp.float32) * 0.1
    b1 = jax.random.normal(k_b1, (embedding_size,), dtype=jnp.float32) * 0.1
    w2 = jax.random.normal(k_w2, (embedding_size,), dtype=jnp.float32) * 0.1
    b2 = jax.random.normal(k_b2, (), dtype=jnp.float32) * 0.1

    q_kernel = link_predictor_qvalues(z, w1, b1, w2, b2)
    jax.block_until_ready(q_kernel)

    q_ref = reference_qvalues(z, w1, b1, w2, b2)
    assert q_kernel.shape == (num_nodes * num_nodes,)
    assert jnp.allclose(q_kernel, q_ref, atol=1e-4, rtol=1e-4), (
        float(jnp.max(jnp.abs(q_kernel - q_ref)))
    )

    print("KERNEL_OK")
</pallas_src>

<mosaic_0001>
module attributes {stable_mosaic.version = 11 : i64} {
  func.func @link_pred_kernel(%arg0: i32, %arg1: i32, %arg2: memref<128x32xf32, #tpu.memory_space<vmem>>, %arg3: memref<32x256xf32, #tpu.memory_space<vmem>>, %arg4: memref<32xf32, #tpu.memory_space<smem>>, %arg5: memref<1xf32, #tpu.memory_space<smem>>, %arg6: memref<128x256xf32, #tpu.memory_space<vmem>>) attributes {dimension_semantics = [#tpu.dimension_semantics<parallel>, #tpu.dimension_semantics<parallel>], iteration_bounds = array<i64: 2, 1>, scalar_prefetch = 0 : i64, scratch_operands = 0 : i64, tpu.core_type = #tpu.core_type<tc>, window_params = [{transform_indices = @transform_0, window_bounds = array<i64: 128, 32>}, {transform_indices = @transform_1, window_bounds = array<i64: 32, 256>}, {transform_indices = @transform_2, window_bounds = array<i64: 32>}, {transform_indices = @transform_3, window_bounds = array<i64: 1>}, {transform_indices = @transform_4, window_bounds = array<i64: 128, 256>}]} {
    %c0 = arith.constant 0 : index
    %0 = memref.load %arg5[%c0] : memref<1xf32, #tpu.memory_space<smem>>
    %c0_i32 = arith.constant 0 : i32
    %c16_i32 = arith.constant 16 : i32
    %1 = arith.addi %c0_i32, %c16_i32 : i32
    %c1_i32 = arith.constant 1 : i32
    scf.for %arg7 = %c0_i32 to %1 step %c1_i32  : i32 {
      %c8_i32 = arith.constant 8 : i32
      %2 = arith.muli %arg7, %c8_i32 : i32
      %3 = tpu.assume_multiple %2, 8 : i32
      %4 = arith.index_cast %3 : i32 to index
      %c0_1 = arith.constant 0 : index
      %5 = vector.load %arg2[%4, %c0_1] : memref<128x32xf32, #tpu.memory_space<vmem>>, vector<8x32xf32>
      %6 = vector.broadcast %0 : f32 to vector<8x256xf32>
      %7 = vector.extract_strided_slice %5 {offsets = [0, 0], sizes = [8, 1], strides = [1, 1]} : vector<8x32xf32> to vector<8x1xf32>
      %c0_2 = arith.constant 0 : index
      %c0_3 = arith.constant 0 : index
      %8 = vector.load %arg3[%c0_2, %c0_3] : memref<32x256xf32, #tpu.memory_space<vmem>>, vector<1x256xf32>
      %9 = vector.broadcast %7 : vector<8x1xf32> to vector<8x256xf32>
      %10 = vector.broadcast %8 : vector<1x256xf32> to vector<8x256xf32>
      %11 = arith.addf %9, %10 : vector<8x256xf32>
      %cst = arith.constant 0.000000e+00 : f32
      %12 = vector.broadcast %cst : f32 to vector<8x256xf32>
      %13 = arith.maximumf %11, %12 : vector<8x256xf32>
      %c0_4 = arith.constant 0 : index
      %14 = memref.load %arg4[%c0_4] : memref<32xf32, #tpu.memory_space<smem>>
      %15 = vector.broadcast %14 : f32 to vector<8x256xf32>
      %16 = arith.mulf %13, %15 : vector<8x256xf32>
      %17 = arith.addf %6, %16 : vector<8x256xf32>
      %18 = vector.extract_strided_slice %5 {offsets = [0, 1], sizes = [8, 1], strides = [1, 1]} : vector<8x32xf32> to vector<8x1xf32>
      %c1 = arith.constant 1 : index
      %c0_5 = arith.constant 0 : index
      %19 = vector.load %arg3[%c1, %c0_5] : memref<32x256xf32, #tpu.memory_space<vmem>>, vector<1x256xf32>
      %20 = vector.broadcast %18 : vector<8x1xf32> to vector<8x256xf32>
      %21 = vector.broadcast %19 : vector<1x256xf32> to vector<8x256xf32>
      %22 = arith.addf %20, %21 : vector<8x256xf32>
      %cst_6 = arith.constant 0.000000e+00 : f32
      %23 = vector.broadcast %cst_6 : f32 to vector<8x256xf32>
      %24 = arith.maximumf %22, %23 : vector<8x256xf32>
      %c1_7 = arith.constant 1 : index
      %25 = memref.load %arg4[%c1_7] : memref<32xf32, #tpu.memory_space<smem>>
      %26 = vector.broadcast %25 : f32 to vector<8x256xf32>
      %27 = arith.mulf %24, %26 : vector<8x256xf32>
      %28 = arith.addf %17, %27 : vector<8x256xf32>
      %29 = vector.extract_strided_slice %5 {offsets = [0, 2], sizes = [8, 1], strides = [1, 1]} : vector<8x32xf32> to vector<8x1xf32>
      %c2 = arith.constant 2 : index
      %c0_8 = arith.constant 0 : index
      %30 = vector.load %arg3[%c2, %c0_8] : memref<32x256xf32, #tpu.memory_space<vmem>>, vector<1x256xf32>
      %31 = vector.broadcast %29 : vector<8x1xf32> to vector<8x256xf32>
      %32 = vector.broadcast %30 : vector<1x256xf32> to vector<8x256xf32>
      %33 = arith.addf %31, %32 : vector<8x256xf32>
      %cst_9 = arith.constant 0.000000e+00 : f32
      %34 = vector.broadcast %cst_9 : f32 to vector<8x256xf32>
      %35 = arith.maximumf %33, %34 : vector<8x256xf32>
      %c2_10 = arith.constant 2 : index
      %36 = memref.load %arg4[%c2_10] : memref<32xf32, #tpu.memory_space<smem>>
      %37 = vector.broadcast %36 : f32 to vector<8x256xf32>
      %38 = arith.mulf %35, %37 : vector<8x256xf32>
      %39 = arith.addf %28, %38 : vector<8x256xf32>
      %40 = vector.extract_strided_slice %5 {offsets = [0, 3], sizes = [8, 1], strides = [1, 1]} : vector<8x32xf32> to vector<8x1xf32>
      %c3 = arith.constant 3 : index
      %c0_11 = arith.constant 0 : index
      %41 = vector.load %arg3[%c3, %c0_11] : memref<32x256xf32, #tpu.memory_space<vmem>>, vector<1x256xf32>
      %42 = vector.broadcast %40 : vector<8x1xf32> to vector<8x256xf32>
      %43 = vector.broadcast %41 : vector<1x256xf32> to vector<8x256xf32>
      %44 = arith.addf %42, %43 : vector<8x256xf32>
      %cst_12 = arith.constant 0.000000e+00 : f32
      %45 = vector.broadcast %cst_12 : f32 to vector<8x256xf32>
      %46 = arith.maximumf %44, %45 : vector<8x256xf32>
      %c3_13 = arith.constant 3 : index
      %47 = memref.load %arg4[%c3_13] : memref<32xf32, #tpu.memory_space<smem>>
      %48 = vector.broadcast %47 : f32 to vector<8x256xf32>
      %49 = arith.mulf %46, %48 : vector<8x256xf32>
      %50 = arith.addf %39, %49 : vector<8x256xf32>
      %51 = vector.extract_strided_slice %5 {offsets = [0, 4], sizes = [8, 1], strides = [1, 1]} : vector<8x32xf32> to vector<8x1xf32>
      %c4 = arith.constant 4 : index
      %c0_14 = arith.constant 0 : index
      %52 = vector.load %arg3[%c4, %c0_14] : memref<32x256xf32, #tpu.memory_space<vmem>>, vector<1x256xf32>
      %53 = vector.broadcast %51 : vector<8x1xf32> to vector<8x256xf32>
      %54 = vector.broadcast %52 : vector<1x256xf32> to vector<8x256xf32>
      %55 = arith.addf %53, %54 : vector<8x256xf32>
      %cst_15 = arith.constant 0.000000e+00 : f32
      %56 = vector.broadcast %cst_15 : f32 to vector<8x256xf32>
      %57 = arith.maximumf %55, %56 : vector<8x256xf32>
      %c4_16 = arith.constant 4 : index
      %58 = memref.load %arg4[%c4_16] : memref<32xf32, #tpu.memory_space<smem>>
      %59 = vector.broadcast %58 : f32 to vector<8x256xf32>
      %60 = arith.mulf %57, %59 : vector<8x256xf32>
      %61 = arith.addf %50, %60 : vector<8x256xf32>
      %62 = vector.extract_strided_slice %5 {offsets = [0, 5], sizes = [8, 1], strides = [1, 1]} : vector<8x32xf32> to vector<8x1xf32>
      %c5 = arith.constant 5 : index
      %c0_17 = arith.constant 0 : index
      %63 = vector.load %arg3[%c5, %c0_17] : memref<32x256xf32, #tpu.memory_space<vmem>>, vector<1x256xf32>
      %64 = vector.broadcast %62 : vector<8x1xf32> to vector<8x256xf32>
      %65 = vector.broadcast %63 : vector<1x256xf32> to vector<8x256xf32>
      %66 = arith.addf %64, %65 : vector<8x256xf32>
      %cst_18 = arith.constant 0.000000e+00 : f32
      %67 = vector.broadcast %cst_18 : f32 to vector<8x256xf32>
      %68 = arith.maximumf %66, %67 : vector<8x256xf32>
      %c5_19 = arith.constant 5 : index
      %69 = memref.load %arg4[%c5_19] : memref<32xf32, #tpu.memory_space<smem>>
      %70 = vector.broadcast %69 : f32 to vector<8x256xf32>
      %71 = arith.mulf %68, %70 : vector<8x256xf32>
      %72 = arith.addf %61, %71 : vector<8x256xf32>
      %73 = vector.extract_strided_slice %5 {offsets = [0, 6], sizes = [8, 1], strides = [1, 1]} : vector<8x32xf32> to vector<8x1xf32>
      %c6 = arith.constant 6 : index
      %c0_20 = arith.constant 0 : index
      %74 = vector.load %arg3[%c6, %c0_20] : memref<32x256xf32, #tpu.memory_space<vmem>>, vector<1x256xf32>
      %75 = vector.broadcast %73 : vector<8x1xf32> to vector<8x256xf32>
      %76 = vector.broadcast %74 : vector<1x256xf32> to vector<8x256xf32>
      %77 = arith.addf %75, %76 : vector<8x256xf32>
      %cst_21 = arith.constant 0.000000e+00 : f32
      %78 = vector.broadcast %cst_21 : f32 to vector<8x256xf32>
      %79 = arith.maximumf %77, %78 : vector<8x256xf32>
      %c6_22 = arith.constant 6 : index
      %80 = memref.load %arg4[%c6_22] : memref<32xf32, #tpu.memory_space<smem>>
      %81 = vector.broadcast %80 : f32 to vector<8x256xf32>
      %82 = arith.mulf %79, %81 : vector<8x256xf32>
      %83 = arith.addf %72, %82 : vector<8x256xf32>
      %84 = vector.extract_strided_slice %5 {offsets = [0, 7], sizes = [8, 1], strides = [1, 1]} : vector<8x32xf32> to vector<8x1xf32>
      %c7 = arith.constant 7 : index
      %c0_23 = arith.constant 0 : index
      %85 = vector.load %arg3[%c7, %c0_23] : memref<32x256xf32, #tpu.memory_space<vmem>>, vector<1x256xf32>
      %86 = vector.broadcast %84 : vector<8x1xf32> to vector<8x256xf32>
      %87 = vector.broadcast %85 : vector<1x256xf32> to vector<8x256xf32>
      %88 = arith.addf %86, %87 : vector<8x256xf32>
      %cst_24 = arith.constant 0.000000e+00 : f32
      %89 = vector.broadcast %cst_24 : f32 to vector<8x256xf32>
      %90 = arith.maximumf %88, %89 : vector<8x256xf32>
      %c7_25 = arith.constant 7 : index
      %91 = memref.load %arg4[%c7_25] : memref<32xf32, #tpu.memory_space<smem>>
      %92 = vector.broadcast %91 : f32 to vector<8x256xf32>
      %93 = arith.mulf %90, %92 : vector<8x256xf32>
      %94 = arith.addf %83, %93 : vector<8x256xf32>
      %95 = vector.extract_strided_slice %5 {offsets = [0, 8], sizes = [8, 1], strides = [1, 1]} : vector<8x32xf32> to vector<8x1xf32>
      %c8 = arith.constant 8 : index
      %c0_26 = arith.constant 0 : index
      %96 = vector.load %arg3[%c8, %c0_26] : memref<32x256xf32, #tpu.memory_space<vmem>>, vector<1x256xf32>
      %97 = vector.broadcast %95 : vector<8x1xf32> to vector<8x256xf32>
      %98 = vector.broadcast %96 : vector<1x256xf32> to vector<8x256xf32>
      %99 = arith.addf %97, %98 : vector<8x256xf32>
      %cst_27 = arith.constant 0.000000e+00 : f32
      %100 = vector.broadcast %cst_27 : f32 to vector<8x256xf32>
      %101 = arith.maximumf %99, %100 : vector<8x256xf32>
      %c8_28 = arith.constant 8 : index
      %102 = memref.load %arg4[%c8_28] : memref<32xf32, #tpu.memory_space<smem>>
      %103 = vector.broadcast %102 : f32 to vector<8x256xf32>
      %104 = arith.mulf %101, %103 : vector<8x256xf32>
      %105 = arith.addf %94, %104 : vector<8x256xf32>
      %106 = vector.extract_strided_slice %5 {offsets = [0, 9], sizes = [8, 1], strides = [1, 1]} : vector<8x32xf32> to vector<8x1xf32>
      %c9 = arith.constant 9 : index
      %c0_29 = arith.constant 0 : index
      %107 = vector.load %arg3[%c9, %c0_29] : memref<32x256xf32, #tpu.memory_space<vmem>>, vector<1x256xf32>
      %108 = vector.broadcast %106 : vector<8x1xf32> to vector<8x256xf32>
      %109 = vector.broadcast %107 : vector<1x256xf32> to vector<8x256xf32>
      %110 = arith.addf %108, %109 : vector<8x256xf32>
      %cst_30 = arith.constant 0.000000e+00 : f32
      %111 = vector.broadcast %cst_30 : f32 to vector<8x256xf32>
      %112 = arith.maximumf %110, %111 : vector<8x256xf32>
      %c9_31 = arith.constant 9 : index
      %113 = memref.load %arg4[%c9_31] : memref<32xf32, #tpu.memory_space<smem>>
      %114 = vector.broadcast %113 : f32 to vector<8x256xf32>
      %115 = arith.mulf %112, %114 : vector<8x256xf32>
      %116 = arith.addf %105, %115 : vector<8x256xf32>
      %117 = vector.extract_strided_slice %5 {offsets = [0, 10], sizes = [8, 1], strides = [1, 1]} : vector<8x32xf32> to vector<8x1xf32>
      %c10 = arith.constant 10 : index
      %c0_32 = arith.constant 0 : index
      %118 = vector.load %arg3[%c10, %c0_32] : memref<32x256xf32, #tpu.memory_space<vmem>>, vector<1x256xf32>
      %119 = vector.broadcast %117 : vector<8x1xf32> to vector<8x256xf32>
      %120 = vector.broadcast %118 : vector<1x256xf32> to vector<8x256xf32>
      %121 = arith.addf %119, %120 : vector<8x256xf32>
      %cst_33 = arith.constant 0.000000e+00 : f32
      %122 = vector.broadcast %cst_33 : f32 to vector<8x256xf32>
      %123 = arith.maximumf %121, %122 : vector<8x256xf32>
      %c10_34 = arith.constant 10 : index
      %124 = memref.load %arg4[%c10_34] : memref<32xf32, #tpu.memory_space<smem>>
      %125 = vector.broadcast %124 : f32 to vector<8x256xf32>
      %126 = arith.mulf %123, %125 : vector<8x256xf32>
      %127 = arith.addf %116, %126 : vector<8x256xf32>
      %128 = vector.extract_strided_slice %5 {offsets = [0, 11], sizes = [8, 1], strides = [1, 1]} : vector<8x32xf32> to vector<8x1xf32>
      %c11 = arith.constant 11 : index
      %c0_35 = arith.constant 0 : index
      %129 = vector.load %arg3[%c11, %c0_35] : memref<32x256xf32, #tpu.memory_space<vmem>>, vector<1x256xf32>
      %130 = vector.broadcast %128 : vector<8x1xf32> to vector<8x256xf32>
      %131 = vector.broadcast %129 : vector<1x256xf32> to vector<8x256xf32>
      %132 = arith.addf %130, %131 : vector<8x256xf32>
      %cst_36 = arith.constant 0.000000e+00 : f32
      %133 = vector.broadcast %cst_36 : f32 to vector<8x256xf32>
      %134 = arith.maximumf %132, %133 : vector<8x256xf32>
      %c11_37 = arith.constant 11 : index
      %135 = memref.load %arg4[%c11_37] : memref<32xf32, #tpu.memory_space<smem>>
      %136 = vector.broadcast %135 : f32 to vector<8x256xf32>
      %137 = arith.mulf %134, %136 : vector<8x256xf32>
      %138 = arith.addf %127, %137 : vector<8x256xf32>
      %139 = vector.extract_strided_slice %5 {offsets = [0, 12], sizes = [8, 1], strides = [1, 1]} : vector<8x32xf32> to vector<8x1xf32>
      %c12 = arith.constant 12 : index
      %c0_38 = arith.constant 0 : index
      %140 = vector.load %arg3[%c12, %c0_38] : memref<32x256xf32, #tpu.memory_space<vmem>>, vector<1x256xf32>
      %141 = vector.broadcast %139 : vector<8x1xf32> to vector<8x256xf32>
      %142 = vector.broadcast %140 : vector<1x256xf32> to vector<8x256xf32>
      %143 = arith.addf %141, %142 : vector<8x256xf32>
      %cst_39 = arith.constant 0.000000e+00 : f32
      %144 = vector.broadcast %cst_39 : f32 to vector<8x256xf32>
      %145 = arith.maximumf %143, %144 : vector<8x256xf32>
      %c12_40 = arith.constant 12 : index
      %146 = memref.load %arg4[%c12_40] : memref<32xf32, #tpu.memory_space<smem>>
      %147 = vector.broadcast %146 : f32 to vector<8x256xf32>
      %148 = arith.mulf %145, %147 : vector<8x256xf32>
      %149 = arith.addf %138, %148 : vector<8x256xf32>
      %150 = vector.extract_strided_slice %5 {offsets = [0, 13], sizes = [8, 1], strides = [1, 1]} : vector<8x32xf32> to vector<8x1xf32>
      %c13 = arith.constant 13 : index
      %c0_41 = arith.constant 0 : index
      %151 = vector.load %arg3[%c13, %c0_41] : memref<32x256xf32, #tpu.memory_space<vmem>>, vector<1x256xf32>
      %152 = vector.broadcast %150 : vector<8x1xf32> to vector<8x256xf32>
      %153 = vector.broadcast %151 : vector<1x256xf32> to vector<8x256xf32>
      %154 = arith.addf %152, %153 : vector<8x256xf32>
      %cst_42 = arith.constant 0.000000e+00 : f32
      %155 = vector.broadcast %cst_42 : f32 to vector<8x256xf32>
      %156 = arith.maximumf %154, %155 : vector<8x256xf32>
      %c13_43 = arith.constant 13 : index
      %157 = memref.load %arg4[%c13_43] : memref<32xf32, #tpu.memory_space<smem>>
      %158 = vector.broadcast %157 : f32 to vector<8x256xf32>
      %159 = arith.mulf %156, %158 : vector<8x256xf32>
      %160 = arith.addf %149, %159 : vector<8x256xf32>
      %161 = vector.extract_strided_slice %5 {offsets = [0, 14], sizes = [8, 1], strides = [1, 1]} : vector<8x32xf32> to vector<8x1xf32>
      %c14 = arith.constant 14 : index
      %c0_44 = arith.constant 0 : index
      %162 = vector.load %arg3[%c14, %c0_44] : memref<32x256xf32, #tpu.memory_space<vmem>>, vector<1x256xf32>
      %163 = vector.broadcast %161 : vector<8x1xf32> to vector<8x256xf32>
      %164 = vector.broadcast %162 : vector<1x256xf32> to vector<8x256xf32>
      %165 = arith.addf %163, %164 : vector<8x256xf32>
      %cst_45 = arith.constant 0.000000e+00 : f32
      %166 = vector.broadcast %cst_45 : f32 to vector<8x256xf32>
      %167 = arith.maximumf %165, %166 : vector<8x256xf32>
      %c14_46 = arith.constant 14 : index
      %168 = memref.load %arg4[%c14_46] : memref<32xf32, #tpu.memory_space<smem>>
      %169 = vector.broadcast %168 : f32 to vector<8x256xf32>
      %170 = arith.mulf %167, %169 : vector<8x256xf32>
      %171 = arith.addf %160, %170 : vector<8x256xf32>
      %172 = vector.extract_strided_slice %5 {offsets = [0, 15], sizes = [8, 1], strides = [1, 1]} : vector<8x32xf32> to vector<8x1xf32>
      %c15 = arith.constant 15 : index
      %c0_47 = arith.constant 0 : index
      %173 = vector.load %arg3[%c15, %c0_47] : memref<32x256xf32, #tpu.memory_space<vmem>>, vector<1x256xf32>
      %174 = vector.broadcast %172 : vector<8x1xf32> to vector<8x256xf32>
      %175 = vector.broadcast %173 : vector<1x256xf32> to vector<8x256xf32>
      %176 = arith.addf %174, %175 : vector<8x256xf32>
      %cst_48 = arith.constant 0.000000e+00 : f32
      %177 = vector.broadcast %cst_48 : f32 to vector<8x256xf32>
      %178 = arith.maximumf %176, %177 : vector<8x256xf32>
      %c15_49 = arith.constant 15 : index
      %179 = memref.load %arg4[%c15_49] : memref<32xf32, #tpu.memory_space<smem>>
      %180 = vector.broadcast %179 : f32 to vector<8x256xf32>
      %181 = arith.mulf %178, %180 : vector<8x256xf32>
      %182 = arith.addf %171, %181 : vector<8x256xf32>
      %183 = vector.extract_strided_slice %5 {offsets = [0, 16], sizes = [8, 1], strides = [1, 1]} : vector<8x32xf32> to vector<8x1xf32>
      %c16 = arith.constant 16 : index
      %c0_50 = arith.constant 0 : index
      %184 = vector.load %arg3[%c16, %c0_50] : memref<32x256xf32, #tpu.memory_space<vmem>>, vector<1x256xf32>
      %185 = vector.broadcast %183 : vector<8x1xf32> to vector<8x256xf32>
      %186 = vector.broadcast %184 : vector<1x256xf32> to vector<8x256xf32>
      %187 = arith.addf %185, %186 : vector<8x256xf32>
      %cst_51 = arith.constant 0.000000e+00 : f32
      %188 = vector.broadcast %cst_51 : f32 to vector<8x256xf32>
      %189 = arith.maximumf %187, %188 : vector<8x256xf32>
      %c16_52 = arith.constant 16 : index
      %190 = memref.load %arg4[%c16_52] : memref<32xf32, #tpu.memory_space<smem>>
      %191 = vector.broadcast %190 : f32 to vector<8x256xf32>
      %192 = arith.mulf %189, %191 : vector<8x256xf32>
      %193 = arith.addf %182, %192 : vector<8x256xf32>
      %194 = vector.extract_strided_slice %5 {offsets = [0, 17], sizes = [8, 1], strides = [1, 1]} : vector<8x32xf32> to vector<8x1xf32>
      %c17 = arith.constant 17 : index
      %c0_53 = arith.constant 0 : index
      %195 = vector.load %arg3[%c17, %c0_53] : memref<32x256xf32, #tpu.memory_space<vmem>>, vector<1x256xf32>
      %196 = vector.broadcast %194 : vector<8x1xf32> to vector<8x256xf32>
      %197 = vector.broadcast %195 : vector<1x256xf32> to vector<8x256xf32>
      %198 = arith.addf %196, %197 : vector<8x256xf32>
      %cst_54 = arith.constant 0.000000e+00 : f32
      %199 = vector.broadcast %cst_54 : f32 to vector<8x256xf32>
      %200 = arith.maximumf %198, %199 : vector<8x256xf32>
      %c17_55 = arith.constant 17 : index
      %201 = memref.load %arg4[%c17_55] : memref<32xf32, #tpu.memory_space<smem>>
      %202 = vector.broadcast %201 : f32 to vector<8x256xf32>
      %203 = arith.mulf %200, %202 : vector<8x256xf32>
      %204 = arith.addf %193, %203 : vector<8x256xf32>
      %205 = vector.extract_strided_slice %5 {offsets = [0, 18], sizes = [8, 1], strides = [1, 1]} : vector<8x32xf32> to vector<8x1xf32>
      %c18 = arith.constant 18 : index
      %c0_56 = arith.constant 0 : index
      %206 = vector.load %arg3[%c18, %c0_56] : memref<32x256xf32, #tpu.memory_space<vmem>>, vector<1x256xf32>
      %207 = vector.broadcast %205 : vector<8x1xf32> to vector<8x256xf32>
      %208 = vector.broadcast %206 : vector<1x256xf32> to vector<8x256xf32>
      %209 = arith.addf %207, %208 : vector<8x256xf32>
      %cst_57 = arith.constant 0.000000e+00 : f32
      %210 = vector.broadcast %cst_57 : f32 to vector<8x256xf32>
      %211 = arith.maximumf %209, %210 : vector<8x256xf32>
      %c18_58 = arith.constant 18 : index
      %212 = memref.load %arg4[%c18_58] : memref<32xf32, #tpu.memory_space<smem>>
      %213 = vector.broadcast %212 : f32 to vector<8x256xf32>
      %214 = arith.mulf %211, %213 : vector<8x256xf32>
      %215 = arith.addf %204, %214 : vector<8x256xf32>
      %216 = vector.extract_strided_slice %5 {offsets = [0, 19], sizes = [8, 1], strides = [1, 1]} : vector<8x32xf32> to vector<8x1xf32>
      %c19 = arith.constant 19 : index
      %c0_59 = arith.constant 0 : index
      %217 = vector.load %arg3[%c19, %c0_59] : memref<32x256xf32, #tpu.memory_space<vmem>>, vector<1x256xf32>
      %218 = vector.broadcast %216 : vector<8x1xf32> to vector<8x256xf32>
      %219 = vector.broadcast %217 : vector<1x256xf32> to vector<8x256xf32>
      %220 = arith.addf %218, %219 : vector<8x256xf32>
      %cst_60 = arith.constant 0.000000e+00 : f32
      %221 = vector.broadcast %cst_60 : f32 to vector<8x256xf32>
      %222 = arith.maximumf %220, %221 : vector<8x256xf32>
      %c19_61 = arith.constant 19 : index
      %223 = memref.load %arg4[%c19_61] : memref<32xf32, #tpu.memory_space<smem>>
      %224 = vector.broadcast %223 : f32 to vector<8x256xf32>
      %225 = arith.mulf %222, %224 : vector<8x256xf32>
      %226 = arith.addf %215, %225 : vector<8x256xf32>
      %227 = vector.extract_strided_slice %5 {offsets = [0, 20], sizes = [8, 1], strides = [1, 1]} : vector<8x32xf32> to vector<8x1xf32>
      %c20 = arith.constant 20 : index
      %c0_62 = arith.constant 0 : index
      %228 = vector.load %arg3[%c20, %c0_62] : memref<32x256xf32, #tpu.memory_space<vmem>>, vector<1x256xf32>
      %229 = vector.broadcast %227 : vector<8x1xf32> to vector<8x256xf32>
      %230 = vector.broadcast %228 : vector<1x256xf32> to vector<8x256xf32>
      %231 = arith.addf %229, %230 : vector<8x256xf32>
      %cst_63 = arith.constant 0.000000e+00 : f32
      %232 = vector.broadcast %cst_63 : f32 to vector<8x256xf32>
      %233 = arith.maximumf %231, %232 : vector<8x256xf32>
      %c20_64 = arith.constant 20 : index
      %234 = memref.load %arg4[%c20_64] : memref<32xf32, #tpu.memory_space<smem>>
      %235 = vector.broadcast %234 : f32 to vector<8x256xf32>
      %236 = arith.mulf %233, %235 : vector<8x256xf32>
      %237 = arith.addf %226, %236 : vector<8x256xf32>
      %238 = vector.extract_strided_slice %5 {offsets = [0, 21], sizes = [8, 1], strides = [1, 1]} : vector<8x32xf32> to vector<8x1xf32>
      %c21 = arith.constant 21 : index
      %c0_65 = arith.constant 0 : index
      %239 = vector.load %arg3[%c21, %c0_65] : memref<32x256xf32, #tpu.memory_space<vmem>>, vector<1x256xf32>
      %240 = vector.broadcast %238 : vector<8x1xf32> to vector<8x256xf32>
      %241 = vector.broadcast %239 : vector<1x256xf32> to vector<8x256xf32>
      %242 = arith.addf %240, %241 : vector<8x256xf32>
      %cst_66 = arith.constant 0.000000e+00 : f32
      %243 = vector.broadcast %cst_66 : f32 to vector<8x256xf32>
      %244 = arith.maximumf %242, %243 : vector<8x256xf32>
      %c21_67 = arith.constant 21 : index
      %245 = memref.load %arg4[%c21_67] : memref<32xf32, #tpu.memory_space<smem>>
      %246 = vector.broadcast %245 : f32 to vector<8x256xf32>
      %247 = arith.mulf %244, %246 : vector<8x256xf32>
      %248 = arith.addf %237, %247 : vector<8x256xf32>
      %249 = vector.extract_strided_slice %5 {offsets = [0, 22], sizes = [8, 1], strides = [1, 1]} : vector<8x32xf32> to vector<8x1xf32>
      %c22 = arith.constant 22 : index
      %c0_68 = arith.constant 0 : index
      %250 = vector.load %arg3[%c22, %c0_68] : memref<32x256xf32, #tpu.memory_space<vmem>>, vector<1x256xf32>
      %251 = vector.broadcast %249 : vector<8x1xf32> to vector<8x256xf32>
      %252 = vector.broadcast %250 : vector<1x256xf32> to vector<8x256xf32>
      %253 = arith.addf %251, %252 : vector<8x256xf32>
      %cst_69 = arith.constant 0.000000e+00 : f32
      %254 = vector.broadcast %cst_69 : f32 to vector<8x256xf32>
      %255 = arith.maximumf %253, %254 : vector<8x256xf32>
      %c22_70 = arith.constant 22 : index
      %256 = memref.load %arg4[%c22_70] : memref<32xf32, #tpu.memory_space<smem>>
      %257 = vector.broadcast %256 : f32 to vector<8x256xf32>
      %258 = arith.mulf %255, %257 : vector<8x256xf32>
      %259 = arith.addf %248, %258 : vector<8x256xf32>
      %260 = vector.extract_strided_slice %5 {offsets = [0, 23], sizes = [8, 1], strides = [1, 1]} : vector<8x32xf32> to vector<8x1xf32>
      %c23 = arith.constant 23 : index
      %c0_71 = arith.constant 0 : index
      %261 = vector.load %arg3[%c23, %c0_71] : memref<32x256xf32, #tpu.memory_space<vmem>>, vector<1x256xf32>
      %262 = vector.broadcast %260 : vector<8x1xf32> to vector<8x256xf32>
      %263 = vector.broadcast %261 : vector<1x256xf32> to vector<8x256xf32>
      %264 = arith.addf %262, %263 : vector<8x256xf32>
      %cst_72 = arith.constant 0.000000e+00 : f32
      %265 = vector.broadcast %cst_72 : f32 to vector<8x256xf32>
      %266 = arith.maximumf %264, %265 : vector<8x256xf32>
      %c23_73 = arith.constant 23 : index
      %267 = memref.load %arg4[%c23_73] : memref<32xf32, #tpu.memory_space<smem>>
      %268 = vector.broadcast %267 : f32 to vector<8x256xf32>
      %269 = arith.mulf %266, %268 : vector<8x256xf32>
      %270 = arith.addf %259, %269 : vector<8x256xf32>
      %271 = vector.extract_strided_slice %5 {offsets = [0, 24], sizes = [8, 1], strides = [1, 1]} : vector<8x32xf32> to vector<8x1xf32>
      %c24 = arith.constant 24 : index
      %c0_74 = arith.constant 0 : index
      %272 = vector.load %arg3[%c24, %c0_74] : memref<32x256xf32, #tpu.memory_space<vmem>>, vector<1x256xf32>
      %273 = vector.broadcast %271 : vector<8x1xf32> to vector<8x256xf32>
      %274 = vector.broadcast %272 : vector<1x256xf32> to vector<8x256xf32>
      %275 = arith.addf %273, %274 : vector<8x256xf32>
      %cst_75 = arith.constant 0.000000e+00 : f32
      %276 = vector.broadcast %cst_75 : f32 to vector<8x256xf32>
      %277 = arith.maximumf %275, %276 : vector<8x256xf32>
      %c24_76 = arith.constant 24 : index
      %278 = memref.load %arg4[%c24_76] : memref<32xf32, #tpu.memory_space<smem>>
      %279 = vector.broadcast %278 : f32 to vector<8x256xf32>
      %280 = arith.mulf %277, %279 : vector<8x256xf32>
      %281 = arith.addf %270, %280 : vector<8x256xf32>
      %282 = vector.extract_strided_slice %5 {offsets = [0, 25], sizes = [8, 1], strides = [1, 1]} : vector<8x32xf32> to vector<8x1xf32>
      %c25 = arith.constant 25 : index
      %c0_77 = arith.constant 0 : index
      %283 = vector.load %arg3[%c25, %c0_77] : memref<32x256xf32, #tpu.memory_space<vmem>>, vector<1x256xf32>
      %284 = vector.broadcast %282 : vector<8x1xf32> to vector<8x256xf32>
      %285 = vector.broadcast %283 : vector<1x256xf32> to vector<8x256xf32>
      %286 = arith.addf %284, %285 : vector<8x256xf32>
      %cst_78 = arith.constant 0.000000e+00 : f32
      %287 = vector.broadcast %cst_78 : f32 to vector<8x256xf32>
      %288 = arith.maximumf %286, %287 : vector<8x256xf32>
      %c25_79 = arith.constant 25 : index
      %289 = memref.load %arg4[%c25_79] : memref<32xf32, #tpu.memory_space<smem>>
      %290 = vector.broadcast %289 : f32 to vector<8x256xf32>
      %291 = arith.mulf %288, %290 : vector<8x256xf32>
      %292 = arith.addf %281, %291 : vector<8x256xf32>
      %293 = vector.extract_strided_slice %5 {offsets = [0, 26], sizes = [8, 1], strides = [1, 1]} : vector<8x32xf32> to vector<8x1xf32>
      %c26 = arith.constant 26 : index
      %c0_80 = arith.constant 0 : index
      %294 = vector.load %arg3[%c26, %c0_80] : memref<32x256xf32, #tpu.memory_space<vmem>>, vector<1x256xf32>
      %295 = vector.broadcast %293 : vector<8x1xf32> to vector<8x256xf32>
      %296 = vector.broadcast %294 : vector<1x256xf32> to vector<8x256xf32>
      %297 = arith.addf %295, %296 : vector<8x256xf32>
      %cst_81 = arith.constant 0.000000e+00 : f32
      %298 = vector.broadcast %cst_81 : f32 to vector<8x256xf32>
      %299 = arith.maximumf %297, %298 : vector<8x256xf32>
      %c26_82 = arith.constant 26 : index
      %300 = memref.load %arg4[%c26_82] : memref<32xf32, #tpu.memory_space<smem>>
      %301 = vector.broadcast %300 : f32 to vector<8x256xf32>
      %302 = arith.mulf %299, %301 : vector<8x256xf32>
      %303 = arith.addf %292, %302 : vector<8x256xf32>
      %304 = vector.extract_strided_slice %5 {offsets = [0, 27], sizes = [8, 1], strides = [1, 1]} : vector<8x32xf32> to vector<8x1xf32>
      %c27 = arith.constant 27 : index
      %c0_83 = arith.constant 0 : index
      %305 = vector.load %arg3[%c27, %c0_83] : memref<32x256xf32, #tpu.memory_space<vmem>>, vector<1x256xf32>
      %306 = vector.broadcast %304 : vector<8x1xf32> to vector<8x256xf32>
      %307 = vector.broadcast %305 : vector<1x256xf32> to vector<8x256xf32>
      %308 = arith.addf %306, %307 : vector<8x256xf32>
      %cst_84 = arith.constant 0.000000e+00 : f32
      %309 = vector.broadcast %cst_84 : f32 to vector<8x256xf32>
      %310 = arith.maximumf %308, %309 : vector<8x256xf32>
      %c27_85 = arith.constant 27 : index
      %311 = memref.load %arg4[%c27_85] : memref<32xf32, #tpu.memory_space<smem>>
      %312 = vector.broadcast %311 : f32 to vector<8x256xf32>
      %313 = arith.mulf %310, %312 : vector<8x256xf32>
      %314 = arith.addf %303, %313 : vector<8x256xf32>
      %315 = vector.extract_strided_slice %5 {offsets = [0, 28], sizes = [8, 1], strides = [1, 1]} : vector<8x32xf32> to vector<8x1xf32>
      %c28 = arith.constant 28 : index
      %c0_86 = arith.constant 0 : index
      %316 = vector.load %arg3[%c28, %c0_86] : memref<32x256xf32, #tpu.memory_space<vmem>>, vector<1x256xf32>
      %317 = vector.broadcast %315 : vector<8x1xf32> to vector<8x256xf32>
      %318 = vector.broadcast %316 : vector<1x256xf32> to vector<8x256xf32>
      %319 = arith.addf %317, %318 : vector<8x256xf32>
      %cst_87 = arith.constant 0.000000e+00 : f32
      %320 = vector.broadcast %cst_87 : f32 to vector<8x256xf32>
      %321 = arith.maximumf %319, %320 : vector<8x256xf32>
      %c28_88 = arith.constant 28 : index
      %322 = memref.load %arg4[%c28_88] : memref<32xf32, #tpu.memory_space<smem>>
      %323 = vector.broadcast %322 : f32 to vector<8x256xf32>
      %324 = arith.mulf %321, %323 : vector<8x256xf32>
      %325 = arith.addf %314, %324 : vector<8x256xf32>
      %326 = vector.extract_strided_slice %5 {offsets = [0, 29], sizes = [8, 1], strides = [1, 1]} : vector<8x32xf32> to vector<8x1xf32>
      %c29 = arith.constant 29 : index
      %c0_89 = arith.constant 0 : index
      %327 = vector.load %arg3[%c29, %c0_89] : memref<32x256xf32, #tpu.memory_space<vmem>>, vector<1x256xf32>
      %328 = vector.broadcast %326 : vector<8x1xf32> to vector<8x256xf32>
      %329 = vector.broadcast %327 : vector<1x256xf32> to vector<8x256xf32>
      %330 = arith.addf %328, %329 : vector<8x256xf32>
      %cst_90 = arith.constant 0.000000e+00 : f32
      %331 = vector.broadcast %cst_90 : f32 to vector<8x256xf32>
      %332 = arith.maximumf %330, %331 : vector<8x256xf32>
      %c29_91 = arith.constant 29 : index
      %333 = memref.load %arg4[%c29_91] : memref<32xf32, #tpu.memory_space<smem>>
      %334 = vector.broadcast %333 : f32 to vector<8x256xf32>
      %335 = arith.mulf %332, %334 : vector<8x256xf32>
      %336 = arith.addf %325, %335 : vector<8x256xf32>
      %337 = vector.extract_strided_slice %5 {offsets = [0, 30], sizes = [8, 1], strides = [1, 1]} : vector<8x32xf32> to vector<8x1xf32>
      %c30 = arith.constant 30 : index
      %c0_92 = arith.constant 0 : index
      %338 = vector.load %arg3[%c30, %c0_92] : memref<32x256xf32, #tpu.memory_space<vmem>>, vector<1x256xf32>
      %339 = vector.broadcast %337 : vector<8x1xf32> to vector<8x256xf32>
      %340 = vector.broadcast %338 : vector<1x256xf32> to vector<8x256xf32>
      %341 = arith.addf %339, %340 : vector<8x256xf32>
      %cst_93 = arith.constant 0.000000e+00 : f32
      %342 = vector.broadcast %cst_93 : f32 to vector<8x256xf32>
      %343 = arith.maximumf %341, %342 : vector<8x256xf32>
      %c30_94 = arith.constant 30 : index
      %344 = memref.load %arg4[%c30_94] : memref<32xf32, #tpu.memory_space<smem>>
      %345 = vector.broadcast %344 : f32 to vector<8x256xf32>
      %346 = arith.mulf %343, %345 : vector<8x256xf32>
      %347 = arith.addf %336, %346 : vector<8x256xf32>
      %348 = vector.extract_strided_slice %5 {offsets = [0, 31], sizes = [8, 1], strides = [1, 1]} : vector<8x32xf32> to vector<8x1xf32>
      %c31 = arith.constant 31 : index
      %c0_95 = arith.constant 0 : index
      %349 = vector.load %arg3[%c31, %c0_95] : memref<32x256xf32, #tpu.memory_space<vmem>>, vector<1x256xf32>
      %350 = vector.broadcast %348 : vector<8x1xf32> to vector<8x256xf32>
      %351 = vector.broadcast %349 : vector<1x256xf32> to vector<8x256xf32>
      %352 = arith.addf %350, %351 : vector<8x256xf32>
      %cst_96 = arith.constant 0.000000e+00 : f32
      %353 = vector.broadcast %cst_96 : f32 to vector<8x256xf32>
      %354 = arith.maximumf %352, %353 : vector<8x256xf32>
      %c31_97 = arith.constant 31 : index
      %355 = memref.load %arg4[%c31_97] : memref<32xf32, #tpu.memory_space<smem>>
      %356 = vector.broadcast %355 : f32 to vector<8x256xf32>
      %357 = arith.mulf %354, %356 : vector<8x256xf32>
      %358 = arith.addf %347, %357 : vector<8x256xf32>
      %359 = arith.index_cast %3 : i32 to index
      %c0_98 = arith.constant 0 : index
      %360 = vector.load %arg6[%359, %c0_98] : memref<128x256xf32, #tpu.memory_space<vmem>>, vector<8x256xf32>
      tpu.vector_store %arg6[%359, %c0_98], %358 {strides = array<i32>} : memref<128x256xf32, #tpu.memory_space<vmem>>, vector<8x256xf32>,
    }
    %c16_i32_0 = arith.constant 16 : i32
    return
  }
  func.func @transform_0(%arg0: i32, %arg1: i32) -> (i32, i32) {
    %c0_i32 = arith.constant 0 : i32
    %c0_i32_0 = arith.constant 0 : i32
    return %arg0, %c0_i32 : i32, i32
  }
  func.func @transform_1(%arg0: i32, %arg1: i32) -> (i32, i32) {
    %c0_i32 = arith.constant 0 : i32
    %c0_i32_0 = arith.constant 0 : i32
    return %c0_i32, %arg1 : i32, i32
  }
  func.func @transform_2(%arg0: i32, %arg1: i32) -> i32 {
    %c0_i32 = arith.constant 0 : i32
    %c0_i32_0 = arith.constant 0 : i32
    return %c0_i32 : i32
  }
  func.func @transform_3(%arg0: i32, %arg1: i32) -> i32 {
    %c0_i32 = arith.constant 0 : i32
    %c0_i32_0 = arith.constant 0 : i32
    return %c0_i32 : i32
  }
  func.func @transform_4(%arg0: i32, %arg1: i32) -> (i32, i32) {
    %c0_i32 = arith.constant 0 : i32
    return %arg0, %arg1 : i32, i32
  }
}

</mosaic_0001>

<bundles_post_ra>
// kernel: tpu_custom_call.1
= control target key start
LH: loop header
LB: loop body
LE: loop exit
PB: predicated region body
PF: predicated region fallthrough
CT: control target
= control target key end

     0   :  { %s1833_s0 = inlined_call_operand.vmem [shape: f32[256,32], index: 0, kind: input, shape index: {}]   ;;  %s1834_s1 = inlined_call_operand.vmem [shape: f32[32,256], index: 1, kind: input, shape index: {}]   ;;  %s1835_s2 = inlined_call_operand.vmem [shape: f32[32], index: 2, kind: input, shape index: {}]   ;;  %s1836_s3 = inlined_call_operand.<no memory space> [shape: f32[1], index: 3, kind: input, shape index: {}]   ;;  %s1837_s4 = inlined_call_operand.hbm [shape: f32[256,256], index: 4, kind: output, shape index: {}]  }
   0x1   :  { %9 = sst [smem:[#allocation2]] %s1836_s3 }
   0x2   :  { %10 = vsyncpa [#allocation5], 0 }
   0x3   :  { %11 = vsyncpa [#allocation4], 0 }
   0x4   :  { %13 = vsyncpa [#allocation4 + $0x1], 0  ;;  %s1465_s17 = smov 0   ;;  %s1467_s18 = smov 0  }
   0x5   :  { %s1469_s19 = smov 0   ;;  %s1471_s20 = smov 0  }
   0x6   :  { %s1473_s21 = smov 0   ;;  %s1475_s22 = smov 0  }
   0x7 LB: > { %s1069_s3 = sadd.s32 4294967295, %s1396_s22   ;;  %s1070_s23 = sadd.s32 4294967294, %s1396_s22   ;;  %s1396_s22 = sphi %s1475_s22, %s19_s22   ;;  %s1392_s21 = sphi %s1473_s21, %s1844_s21   ;;  %s1388_s20 = sphi %s1471_s20, %s1843_s20   ;;  %s1384_s19 = sphi %s1469_s19, %s1842_s19   ;;  %s1380_s18 = sphi %s1467_s18, %s1841_s18   ;;  %s1376_s17 = sphi %s1465_s17, %s1840_s17  }
   0x8   : > { %s31_s24 = sadd.s32 1, %s1392_s21  ;;  %s134_s25 = sadd.s32 1, %s1384_s19 }
   0x9   : > { %p33_p0 = scmp.ge.s32.totalorder %s31_s24, 2  ;;  %p144_p1 = scmp.ne.s32.totalorder %s1384_s19, %s1380_s18 }
   0xa   : > { %p145_p2 = scmp.eq.s32.totalorder %s1069_s3, 1  ;;  %p150_p3 = scmp.ne.s32.totalorder %s1380_s18, %s1376_s17 }
   0xb   : > { %s1846_s24 = smov (%p33_p0, %s31_s24), 0  ;;  %p151_p5 = scmp.eq.s32.totalorder %s1070_s23, 1 }
   0xc   : > { %p1505_p4 = por %p145_p2, %p144_p1  ;;  %s129_s27 = ssub.s32 %s1392_s21, %s1846_s24 }
   0xd   : > { %p1071_p6 = scmp.ge.s32.totalorder %s1396_s22, 1  ;;  %p132_p7 = scmp.eq.s32.totalorder %s129_s27, 0 }
   0xe   : > { %p1512_p8 = por %p151_p5, %p150_p3  ;;  %p158_p9 = scmp.lt.s32.totalorder %s1396_s22, 3 }
   0xf   : > { %s1518_s29 = scalar_select %p132_p7, %s1384_s19, %s134_s25  }
  0x10   : > { %p159_p10 = pnand %p1071_p6, %p158_p9  ;;  %p1168_p11 = scmp.eq.s32.totalorder %s1069_s3, 0 }
  0x11   : > { %s179_s6 = sshll.u32 %s1835_s2, 4  ;;  %s1402_s7 = smov [#allocation3]   ;;  %s180_s6 = int_to_ptr.vmem [resolvable:$true] %s179_s6 }
  0x12   : > { %p1160_p12 = pneg %p159_p10  ;;  %204 = sbr.rel (%p159_p10) target bundleno = 271 (0x10f), region = 36 }
  0x14   : > { %p1161_p13 = pnand %p1168_p11, %p1160_p12 }
  0x16   : > { %1163 = dma.vmem_to_smem (!%p1161_p13), %s180_s6, 16, %s1402_s7, [#allocation5]  }
  0x17   : > { %1367 = dma.done.wait (%p1168_p11), [#allocation5], 16  }
  0x18   : > { %1369 = vsyncadd (%p1168_p11), [#allocation5], 4294967280 }
  0x19   : > { %211 = sfence }
  0x1a   : > { %s234_s8 = sand.u32 1, %s1380_s18   ;;  %s1078_s9 = sshll.u32 %s1388_s20, 4 }
  0x1b   : > { %s1527_s10 = sshll.u32 %s234_s8, 8  ;;  %p238_p0 = scmp.lt.s32.totalorder %s1078_s9, 31 }
  0x1c   : > { %s1529_s11 = sld [smem:[#allocation2]]  ;;  %s236_s16 = scalar_lea.vmem [#allocation6], %s1527_s10 }
  0x1d   : > { %s1848_s9 = smov (!%p238_p0, %s1078_s9), 31  ;;  %s1537_s3 = smov 0  }
  0x1e   : > { %s1079_s12 = sshll.u32 %s1848_s9, 3 }
  0x1f   : > { %s1534_s15 = scalar_lea.vmem %s1833_s0, %s1079_s12 }
  0x20 LB: >> { %v1403_v0 = vmov 2   ;;  %v1404_v1 = vmov 0   ;;  %s1080_s23 = sshll.u32 %s1400_s3, 3  ;;  %v1405_v2 = vmov 4   ;;  %v1406_v4 = vmov 3   ;;  %s277_s5 = sld [smem:[#allocation3]]  ;;  %s1400_s3 = sphi %s1537_s3, %s257_s3  }
  0x21   : >> { %1264 = vset.pattern.permute.xlu1 %v1403_v0  ;;  %1262 = vset.pattern.permute.xlu0 %v1404_v1  ;;  %s259_s25 = scalar_lea.vmem %s1534_s15, %s1080_s23  ;;  %v1407_v5 = vmov 1   ;;  %v1408_v6 = vmov 5   ;;  %v1409_v7 = vmov 6   ;;  %v1410_v8 = vmov 8   ;;  %s1588_s9 = sld [smem:[#allocation3 + $0x2]] }
  0x22   : >> { %1266 = vset.pattern.permute.xlu2 %v1405_v2  ;;  %v1546_v3 = vld [vmem:[%s259_s25] sm:$0xff]  ;;  %v1411_v9 = vmov 7   ;;  %v1412_v10 = vmov 9   ;;  %v1413_v11 = vmov 13   ;;  %v1414_v12 = vmov 10   ;;  %s1593_s14 = sld [smem:[#allocation3 + $0x1]] }
  0x23   : >> { %307 = vperm.xlu1 %1264, %v1546_v3   ;;  %265 = vperm.xlu0 %1262, %v1546_v3   ;;  %v1415_v13 = vmov 11   ;;  %v1416_v14 = vmov 18   ;;  %v1417_v15 = vmov 12   ;;  %v1418_v16 = vmov 14   ;;  %s1611_s13 = sld [smem:[#allocation3 + $0x4]]  ;;  %s257_s3 = sadd.s32 1, %s1400_s3  }
  0x24   : >> { %349 = vperm.xlu2 %1266, %v1546_v3   ;;  %v1419_v17 = vmov 23   ;;  %v1420_v18 = vmov 15   ;;  %v1421_v19 = vmov 16   ;;  %v1422_v20 = vmov 17   ;;  %s1627_s6 = sld [smem:[#allocation3 + $0x6]]  ;;  %p254_p1 = scmp.ge.s32.totalorder %s257_s3, 16  }
  0x25   : >> { %v1423_v21 = vmov 28   ;;  %v1424_v22 = vmov 19   ;;  %v1425_v23 = vmov 20   ;;  %v1426_v24 = vmov 31   ;;  %s1643_s25 = sld [smem:[#allocation3 + $0x9]]  ;;  %s1330_s15 = scalar_lea.hbm (%p254_p1), %s1837_s4, 512 }
  0x26   : >> { %v1427_v25 = vmov 21   ;;  %v1428_v26 = vmov 22   ;;  %v1429_v27 = vmov 24   ;;  %v1430_v28 = vmov 25   ;;  %s1677_s12 = sld [smem:[#allocation3 + $0xe]] }
  0x27   : >> { %v1431_v29 = vmov 26   ;;  %v1432_v30 = vmov 27   ;;  %v1433_v31 = vmov 29   ;;  %v1434_v33 = vmov 30   ;;  %s1687_s30 = sld [smem:[#allocation3 + $0xf]] }
  0x28   : >> { %v262_v34 = vld [vmem:[%s1834_s1] ss:$8 sm:$0x3]  ;;  %v1083_v42 = vld [vmem:[%s1834_s1 + $0x2] ss:$8 sm:$0x3]  ;;  %v278_v48 = vstv %s277_s5  ;;  %v261_v53 = vstv %s1529_s11 }
  0x29   : >> { %v269_v36 = vperm.slane %v262_v34, 0  ;;  %v270_v37 = vperm.slane %v262_v34, 1  ;;  %v1081_v43 = vld [vmem:[%s1834_s1 + $0x1] ss:$8 sm:$0x3]  ;;  %v311_v46 = vperm.slane %v1083_v42, 0  ;;  %v320_v1 = vstv %s1588_s9 }
  0x2a   : >> { %v312_v47 = vperm.slane %v1083_v42, 1  ;;  %v1085_v49 = vld [vmem:[%s1834_s1 + $0x3] ss:$8 sm:$0x3]  ;;  %v290_v50 = vperm.slane %v1081_v43, 0  ;;  %v291_v51 = vperm.slane %v1081_v43, 1 }
  0x2b   : >> { %1265 = vset.pattern.permute.xlu1 %v1406_v4  ;;  %1263 = vset.pattern.permute.xlu0 %v1407_v5  ;;  %v1087_v56 = vld [vmem:[%s1834_s1 + $0x4] ss:$8 sm:$0x3]  ;;  %v332_v59 = vperm.slane %v1085_v49, 0  ;;  %v333_v60 = vperm.slane %v1085_v49, 1  ;;  %s1604_s5 = sld [smem:[#allocation3 + $0x3]]  ;;  %v299_v4 = vstv %s1593_s14 }
  0x2c   : >> { %328 = vperm.xlu1 %1265, %v1546_v3   ;;  %286 = vperm.xlu0 %1263, %v1546_v3   ;;  %v353_v2 = vperm.slane %v1087_v56, 0  ;;  %v1089_v5 = vld [vmem:[%s1834_s1 + $0x5] ss:$8 sm:$0x3]  ;;  %s1613_s9 = sld [smem:[#allocation3 + $0x5]] }
  0x2d   : >> { %1267 = vset.pattern.permute.xlu2 %v1408_v6  ;;  %s1665_s14 = sld [smem:[#allocation3 + $0xc]] }
  0x2e   : >> { %370 = vperm.xlu2 %1267, %v1546_v3   ;;  %s1697_s7 = sld [smem:[#allocation3 + $0x11]] }
  0x2f   : >> { %s1707_s27 = sld [smem:[#allocation3 + $0x12]] }
  0x34   : >> { %1268 = vset.pattern.permute.xlu1 %v1409_v7  ;;  %1270 = vset.pattern.permute.xlu0 %v1410_v8 }
  0x35   : >> { %391 = vperm.xlu1 %1268, %v1546_v3   ;;  %433 = vperm.xlu0 %1270, %v1546_v3  }
  0x36   : >> { %1269 = vset.pattern.permute.xlu2 %v1411_v9 }
  0x37   : >> { %412 = vperm.xlu2 %1269, %v1546_v3  }
  0x3d   : >> { %1271 = vset.pattern.permute.xlu1 %v1412_v10  ;;  %1275 = vset.pattern.permute.xlu0 %v1413_v11 }
  0x3e   : >> { %454 = vperm.xlu1 %1271, %v1546_v3   ;;  %538 = vperm.xlu0 %1275, %v1546_v3  }
  0x3f   : >> { %1272 = vset.pattern.permute.xlu2 %v1414_v12 }
  0x40   : >> { %475 = vperm.xlu2 %1272, %v1546_v3  }
  0x46   : >> { %1273 = vset.pattern.permute.xlu1 %v1415_v13  ;;  %1280 = vset.pattern.permute.xlu0 %v1416_v14 }
  0x47   : >> { %496 = vperm.xlu1 %1273, %v1546_v3   ;;  %643 = vperm.xlu0 %1280, %v1546_v3  }
  0x48   : >> { %1274 = vset.pattern.permute.xlu2 %v1417_v15 }
  0x49   : >> { %517 = vperm.xlu2 %1274, %v1546_v3  }
  0x4f   : >> { %1276 = vset.pattern.permute.xlu1 %v1418_v16  ;;  %1285 = vset.pattern.permute.xlu0 %v1419_v17  ;;  %v374_v16 = vperm.slane %v1089_v5, 0  ;;  %v375_v17 = vperm.slane %v1089_v5, 1  ;;  %v404_v5 = vstv %s1627_s6  ;;  %s1694_s6 = sld [smem:[#allocation3 + $0x10]] }
  0x50   : >> { %559 = vperm.xlu1 %1276, %v1546_v3   ;;  %748 = vperm.xlu0 %1285, %v1546_v3  }
  0x51   : >> { %1277 = vset.pattern.permute.xlu2 %v1420_v18 }
  0x52   : >> { %580 = vperm.xlu2 %1277, %v1546_v3  }
  0x58   : >> { %1278 = vset.pattern.permute.xlu1 %v1421_v19  ;;  %1290 = vset.pattern.permute.xlu0 %v1423_v21 }
  0x59   : >> { %601 = vperm.xlu1 %1278, %v1546_v3   ;;  %853 = vperm.xlu0 %1290, %v1546_v3  }
  0x5a   : >> { %1279 = vset.pattern.permute.xlu2 %v1422_v20 }
  0x5b   : >> { %622 = vperm.xlu2 %1279, %v1546_v3  }
  0x61   : >> { %1281 = vset.pattern.permute.xlu1 %v1424_v22  ;;  %1294 = vset.pattern.permute.xlu0 %v1426_v24  ;;  %v1091_v22 = vld [vmem:[%s1834_s1 + $0x6] ss:$8 sm:$0x3] }
  0x62   : >> { %664 = vperm.xlu1 %1281, %v1546_v3  }
  0x63   : >> { %1282 = vset.pattern.permute.xlu2 %v1425_v23 }
  0x64   : >> { %685 = vperm.xlu2 %1282, %v1546_v3  }
  0x6a   : >> { %1283 = vset.pattern.permute.xlu1 %v1427_v25 }
  0x6b   : >> { %706 = vperm.xlu1 %1283, %v1546_v3  }
  0x6c   : >> { %1284 = vset.pattern.permute.xlu2 %v1428_v26 }
  0x6d   : >> { %727 = vperm.xlu2 %1284, %v1546_v3  }
  0x73   : >> { %1286 = vset.pattern.permute.xlu1 %v1429_v27 }
  0x74   : >> { %769 = vperm.xlu1 %1286, %v1546_v3  }
  0x75   : >> { %1287 = vset.pattern.permute.xlu2 %v1430_v28  ;;  %v341_v28 = vstv %s1604_s5  ;;  %s1629_s5 = sld [smem:[#allocation3 + $0x7]] }
  0x76   : >> { %790 = vperm.xlu2 %1287, %v1546_v3  }
  0x7c   : >> { %1288 = vset.pattern.permute.xlu1 %v1431_v29 }
  0x7d   : >> { %811 = vperm.xlu1 %1288, %v1546_v3  }
  0x7e   : >> { %1289 = vset.pattern.permute.xlu2 %v1432_v30  ;;  %v350_v32 = vpop.permute.xlu2 %349 }
  0x7f   : >> { %832 = vperm.xlu2 %1289, %v1546_v3   ;;  %v357_v18 = vadd.f32 %v353_v2, %v350_v32 }
  0x85   : >> { %1291 = vset.pattern.permute.xlu1 %v1433_v31 }
  0x86   : >> { %874 = vperm.xlu1 %1291, %v1546_v3  }
  0x87   : >> { %1292 = vset.pattern.permute.xlu2 %v1434_v33 }
  0x88   : >> { %895 = vperm.xlu2 %1292, %v1546_v3   ;;  %v1583_v35 = vpop.permute.xlu2 %370 }
  0x89   : >> { %v378_v29 = vadd.f32 %v374_v16, %v1583_v35  ;;  %v379_v30 = vadd.f32 %v375_v17, %v1583_v35  ;;  %v383_v35 = vstv %s1613_s9 }
  0x8e   : >> { %1293 = vset.pattern.permute.xlu1 %v1426_v24 }
  0x8f   : >> { %916 = vperm.xlu1 %1293, %v1546_v3   ;;  %v354_v3 = vperm.slane %v1087_v56, 1 }
  0x91   : >> { %v1598_v52 = vpop.permute.xlu2 %412  ;;  %v358_v19 = vadd.f32 %v354_v3, %v350_v32  ;;  %v1093_v32 = vld [vmem:[%s1834_s1 + $0x7] ss:$8 sm:$0x3] }
  0x92   : >> { %v416_v43 = vperm.slane %v1093_v32, 0 }
  0x95   : >> { %v308_v38 = vpop.permute.xlu1 %307  ;;  %v266_v39 = vpop.permute.xlu0 %265 }
  0x96   : >> { %v273_v40 = vadd.f32 %v269_v36, %v266_v39  ;;  %v274_v41 = vadd.f32 %v270_v37, %v266_v39  ;;  %v315_v57 = vadd.f32 %v311_v46, %v308_v38  ;;  %v316_v58 = vadd.f32 %v312_v47, %v308_v38  ;;  %v1095_v47 = vld [vmem:[%s1834_s1 + $0x10] ss:$8 sm:$0x3] }
  0x97   : >> { %v395_v36 = vperm.slane %v1091_v22, 0  ;;  %v396_v37 = vperm.slane %v1091_v22, 1  ;;  %v362_v38 = vstv %s1611_s13  ;;  %v359_v39 = vmax.f32 %v357_v18, 0.0  ;;  %s1635_s13 = sld [smem:[#allocation3 + $0x8]] }
  0x98   : >> { %v275_v44 = vmax.f32 %v273_v40, 0.0  ;;  %v276_v45 = vmax.f32 %v274_v41, 0.0  ;;  %v317_v10 = vmax.f32 %v315_v57, 0.0  ;;  %v318_v11 = vmax.f32 %v316_v58, 0.0 }
  0x99   : >> { %v360_v40 = vmax.f32 %v358_v19, 0.0  ;;  %v417_v46 = vperm.slane %v1093_v32, 1  ;;  %v438_v56 = vperm.slane %v1095_v47, 1  ;;  %v1101_v19 = vld [vmem:[%s1834_s1 + $0x13] ss:$8 sm:$0x3] }
  0x9a   : >> { %v279_v54 = vmul.f32 %v278_v48, %v275_v44  ;;  %v280_v55 = vmul.f32 %v278_v48, %v276_v45  ;;  %v1618_v23 = vpop.permute.xlu2 %475  ;;  %v321_v24 = vmul.f32 %v320_v1, %v317_v10  ;;  %v322_v25 = vmul.f32 %v320_v1, %v318_v11  ;;  %v1103_v32 = vld [vmem:[%s1834_s1 + $0x14] ss:$8 sm:$0x3] }
  0x9b   : >> { %v380_v44 = vmax.f32 %v378_v29, 0.0  ;;  %v381_v45 = vmax.f32 %v379_v30, 0.0  ;;  %v500_v30 = vperm.slane %v1101_v19, 0 }
  0x9c   : >> { %v281_v6 = vadd.f32 %v279_v54, %v261_v53  ;;  %v282_v7 = vadd.f32 %v280_v55, %v261_v53  ;;  %v363_v53 = vmul.f32 %v362_v38, %v359_v39  ;;  %v364_v54 = vmul.f32 %v362_v38, %v360_v40 }
  0x9d   : >> { %v437_v55 = vperm.slane %v1095_v47, 0  ;;  %v384_v57 = vmul.f32 %v383_v35, %v380_v44  ;;  %v385_v58 = vmul.f32 %v383_v35, %v381_v45  ;;  %v522_v35 = vperm.slane %v1103_v32, 1 }
  0x9e   : >> { %v329_v61 = vpop.permute.xlu1 %328  ;;  %v287_v62 = vpop.permute.xlu0 %286 }
  0x9f   : >> { %v294_v63 = vadd.f32 %v290_v50, %v287_v62  ;;  %v295_v0 = vadd.f32 %v291_v51, %v287_v62  ;;  %v336_v12 = vadd.f32 %v332_v59, %v329_v61  ;;  %v337_v13 = vadd.f32 %v333_v60, %v329_v61  ;;  %v1097_v61 = vld [vmem:[%s1834_s1 + $0x11] ss:$8 sm:$0x3] }
  0xa0   : >> { %v420_v59 = vadd.f32 %v416_v43, %v1598_v52  ;;  %v421_v60 = vadd.f32 %v417_v46, %v1598_v52  ;;  %v1099_v52 = vld [vmem:[%s1834_s1 + $0x12] ss:$8 sm:$0x3]  ;;  %v521_v43 = vperm.slane %v1103_v32, 0 }
  0xa1   : >> { %v296_v8 = vmax.f32 %v294_v63, 0.0  ;;  %v297_v9 = vmax.f32 %v295_v0, 0.0  ;;  %v338_v26 = vmax.f32 %v336_v12, 0.0  ;;  %v339_v27 = vmax.f32 %v337_v13, 0.0 }
  0xa2   : >> { %v423_v10 = vmax.f32 %v421_v60, 0.0  ;;  %v479_v17 = vperm.slane %v1099_v52, 0  ;;  %v480_v18 = vperm.slane %v1099_v52, 1 }
  0xa3   : >> { %v300_v14 = vmul.f32 %v299_v4, %v296_v8  ;;  %v301_v15 = vmul.f32 %v299_v4, %v297_v9  ;;  %v342_v41 = vmul.f32 %v341_v28, %v338_v26  ;;  %v343_v42 = vmul.f32 %v341_v28, %v339_v27  ;;  %v518_v62 = vpop.permute.xlu2 %517 }
  0xa4   : >> { %v459_v8 = vperm.slane %v1097_v61, 1  ;;  %v422_v9 = vmax.f32 %v420_v59, 0.0 }
  0xa5   : >> { %v302_v20 = vadd.f32 %v300_v14, %v281_v6  ;;  %v303_v21 = vadd.f32 %v301_v15, %v282_v7  ;;  %v425_v6 = vstv %s1629_s5  ;;  %v458_v7 = vperm.slane %v1097_v61, 0  ;;  %s1653_s5 = sld [smem:[#allocation3 + $0xa]] }
  0xa7   : >> { %v392_v31 = vpop.permute.xlu1 %391  ;;  %v323_v33 = vadd.f32 %v321_v24, %v302_v20  ;;  %v324_v34 = vadd.f32 %v322_v25, %v303_v21  ;;  %v434_v3 = vpop.permute.xlu0 %433  ;;  %v446_v20 = vstv %s1635_s13  ;;  %v426_v24 = vmul.f32 %v425_v6, %v422_v9  ;;  %s1660_s13 = sld [smem:[#allocation3 + $0xb]] }
  0xa8   : >> { %v399_v50 = vadd.f32 %v395_v36, %v392_v31  ;;  %v400_v51 = vadd.f32 %v396_v37, %v392_v31  ;;  %v441_v11 = vadd.f32 %v437_v55, %v434_v3  ;;  %v442_v12 = vadd.f32 %v438_v56, %v434_v3 }
  0xa9   : >> { %v344_v48 = vadd.f32 %v342_v41, %v323_v33  ;;  %v345_v49 = vadd.f32 %v343_v42, %v324_v34  ;;  %v427_v25 = vmul.f32 %v425_v6, %v423_v10  ;;  %v501_v31 = vperm.slane %v1101_v19, 1  ;;  %v1111_v19 = vld [vmem:[%s1834_s1 + $0x20] ss:$8 sm:$0x3] }
  0xaa   : >> { %v401_v1 = vmax.f32 %v399_v50, 0.0  ;;  %v402_v2 = vmax.f32 %v400_v51, 0.0  ;;  %v443_v26 = vmax.f32 %v441_v11, 0.0  ;;  %v444_v27 = vmax.f32 %v442_v12, 0.0 }
  0xab   : >> { %v365_v63 = vadd.f32 %v363_v53, %v344_v48  ;;  %v366_v0 = vadd.f32 %v364_v54, %v345_v49  ;;  %v483_v33 = vadd.f32 %v479_v17, %v1618_v23  ;;  %v484_v34 = vadd.f32 %v480_v18, %v1618_v23  ;;  %v1105_v23 = vld [vmem:[%s1834_s1 + $0x15] ss:$8 sm:$0x3] }
  0xac   : >> { %v405_v15 = vmul.f32 %v404_v5, %v401_v1  ;;  %v406_v16 = vmul.f32 %v404_v5, %v402_v2  ;;  %v467_v37 = vstv %s1643_s25  ;;  %v1663_v40 = vpop.permute.xlu2 %580  ;;  %v447_v41 = vmul.f32 %v446_v20, %v443_v26  ;;  %s1670_s25 = sld [smem:[#allocation3 + $0xd]] }
  0xad   : >> { %v386_v13 = vadd.f32 %v384_v57, %v365_v63  ;;  %v387_v14 = vadd.f32 %v385_v58, %v366_v0  ;;  %v448_v42 = vmul.f32 %v446_v20, %v444_v27  ;;  %v485_v48 = vmax.f32 %v483_v33, 0.0  ;;  %v1107_v58 = vld [vmem:[%s1834_s1 + $0x16] ss:$8 sm:$0x3] }
  0xae   : >> { %v486_v49 = vmax.f32 %v484_v34, 0.0  ;;  %v488_v53 = vstv %s1653_s5  ;;  %v525_v54 = vadd.f32 %v521_v43, %v518_v62  ;;  %v526_v55 = vadd.f32 %v522_v35, %v518_v62  ;;  %v1113_v33 = vld [vmem:[%s1834_s1 + $0x21] ss:$8 sm:$0x3]  ;;  %s1754_s5 = sld [smem:[#allocation3 + $0x1a]] }
  0xaf   : >> { %v407_v28 = vadd.f32 %v405_v15, %v386_v13  ;;  %v408_v29 = vadd.f32 %v406_v16, %v387_v14  ;;  %v542_v56 = vperm.slane %v1105_v23, 0  ;;  %v543_v57 = vperm.slane %v1105_v23, 1 }
  0xb0   : >> { %v455_v4 = vpop.permute.xlu1 %454  ;;  %v539_v0 = vpop.permute.xlu0 %538  ;;  %v489_v1 = vmul.f32 %v488_v53, %v485_v48  ;;  %v490_v2 = vmul.f32 %v488_v53, %v486_v49  ;;  %v509_v3 = vstv %s1660_s13  ;;  %v563_v5 = vperm.slane %v1107_v58, 0  ;;  %s1724_s13 = sld [smem:[#allocation3 + $0x15]] }
  0xb1   : >> { %v462_v21 = vadd.f32 %v458_v7, %v455_v4  ;;  %v463_v22 = vadd.f32 %v459_v8, %v455_v4  ;;  %v428_v44 = vadd.f32 %v426_v24, %v407_v28  ;;  %v429_v45 = vadd.f32 %v427_v25, %v408_v29  ;;  %v1109_v8 = vld [vmem:[%s1834_s1 + $0x17] ss:$8 sm:$0x3] }
  0xb2   : >> { %v564_v6 = vperm.slane %v1107_v58, 1  ;;  %v527_v52 = vmax.f32 %v525_v54, 0.0  ;;  %v528_v9 = vmax.f32 %v526_v55, 0.0  ;;  %v546_v10 = vadd.f32 %v542_v56, %v539_v0 }
  0xb3   : >> { %v464_v38 = vmax.f32 %v462_v21, 0.0  ;;  %v465_v39 = vmax.f32 %v463_v22, 0.0  ;;  %v449_v59 = vadd.f32 %v447_v41, %v428_v44  ;;  %v450_v60 = vadd.f32 %v448_v42, %v429_v45 }
  0xb4   : >> { %v547_v11 = vadd.f32 %v543_v57, %v539_v0  ;;  %v530_v14 = vstv %s1665_s14  ;;  %v551_v16 = vstv %s1670_s25  ;;  %v584_v17 = vperm.slane %v1109_v8, 0  ;;  %s1713_s25 = sld [smem:[#allocation3 + $0x13]] }
  0xb5   : >> { %v468_v50 = vmul.f32 %v467_v37, %v464_v38  ;;  %v469_v51 = vmul.f32 %v467_v37, %v465_v39  ;;  %v623_v15 = vpop.permute.xlu2 %622  ;;  %v585_v18 = vperm.slane %v1109_v8, 1  ;;  %v531_v25 = vmul.f32 %v530_v14, %v527_v52  ;;  %v1119_v8 = vld [vmem:[%s1834_s1 + $0x24] ss:$8 sm:$0x3] }
  0xb6   : >> { %v532_v26 = vmul.f32 %v530_v14, %v528_v9  ;;  %v548_v27 = vmax.f32 %v546_v10, 0.0  ;;  %v549_v28 = vmax.f32 %v547_v11, 0.0  ;;  %v606_v32 = vperm.slane %v1111_v19, 1 }
  0xb7   : >> { %v470_v4 = vadd.f32 %v468_v50, %v449_v59  ;;  %v471_v62 = vadd.f32 %v469_v51, %v450_v60  ;;  %v588_v34 = vadd.f32 %v584_v17, %v1663_v40  ;;  %v572_v37 = vstv %s1677_s12  ;;  %v1117_v59 = vld [vmem:[%s1834_s1 + $0x23] ss:$8 sm:$0x3]  ;;  %s1742_s12 = sld [smem:[#allocation3 + $0x18]] }
  0xb8   : >> { %v552_v41 = vmul.f32 %v551_v16, %v548_v27  ;;  %v553_v42 = vmul.f32 %v551_v16, %v549_v28  ;;  %v626_v35 = vperm.slane %v1113_v33, 0  ;;  %v627_v44 = vperm.slane %v1113_v33, 1 }
  0xb9   : >> { %v497_v36 = vpop.permute.xlu1 %496  ;;  %v491_v20 = vadd.f32 %v489_v1, %v470_v4  ;;  %v492_v21 = vadd.f32 %v490_v2, %v471_v62  ;;  %v590_v48 = vmax.f32 %v588_v34, 0.0  ;;  %v593_v53 = vstv %s1687_s30  ;;  %v644_v4 = vpop.permute.xlu0 %643 }
  0xba   : >> { %v504_v46 = vadd.f32 %v500_v30, %v497_v36  ;;  %v505_v47 = vadd.f32 %v501_v31, %v497_v36  ;;  %v605_v31 = vperm.slane %v1111_v19, 0  ;;  %v589_v36 = vadd.f32 %v585_v18, %v1663_v40  ;;  %v1115_v40 = vld [vmem:[%s1834_s1 + $0x22] ss:$8 sm:$0x3] }
  0xbb   : >> { %v630_v55 = vadd.f32 %v626_v35, %v623_v15  ;;  %v631_v56 = vadd.f32 %v627_v44, %v623_v15  ;;  %v647_v57 = vperm.slane %v1115_v40, 0  ;;  %v648_v58 = vperm.slane %v1115_v40, 1 }
  0xbc   : >> { %v506_v61 = vmax.f32 %v504_v46, 0.0  ;;  %v507_v63 = vmax.f32 %v505_v47, 0.0  ;;  %v591_v49 = vmax.f32 %v589_v36, 0.0  ;;  %v594_v1 = vmul.f32 %v593_v53, %v590_v48 }
  0xbd   : >> { %v635_v52 = vstv %s1697_s7  ;;  %v632_v9 = vmax.f32 %v630_v55, 0.0  ;;  %v633_v10 = vmax.f32 %v631_v56, 0.0  ;;  %v652_v14 = vadd.f32 %v648_v58, %v644_v4  ;;  %s942_s7 = scalar_lea.sflag (%p254_p1), [#allocation4], %s234_s8 }
  0xbe   : >> { %v510_v12 = vmul.f32 %v509_v3, %v506_v61  ;;  %v511_v13 = vmul.f32 %v509_v3, %v507_v63  ;;  %v686_v54 = vpop.permute.xlu2 %685  ;;  %v595_v2 = vmul.f32 %v593_v53, %v591_v49  ;;  %v614_v3 = vstv %s1694_s6  ;;  %s1715_s6 = sld [smem:[#allocation3 + $0x14]] }
  0xbf   : >> { %v689_v16 = vperm.slane %v1119_v8, 0  ;;  %v690_v17 = vperm.slane %v1119_v8, 1 }
  0xc0   : >> { %v512_v29 = vadd.f32 %v510_v12, %v491_v20  ;;  %v513_v30 = vadd.f32 %v511_v13, %v492_v21  ;;  %v651_v13 = vadd.f32 %v647_v57, %v644_v4 }
  0xc1   : >> { %v693_v33 = vadd.f32 %v689_v16, %v686_v54  ;;  %v694_v34 = vadd.f32 %v690_v17, %v686_v54 }
  0xc2   : >> { %v560_v7 = vpop.permute.xlu1 %559  ;;  %v533_v45 = vadd.f32 %v531_v25, %v512_v29  ;;  %v534_v46 = vadd.f32 %v532_v26, %v513_v30  ;;  %v637_v25 = vmul.f32 %v635_v52, %v633_v10  ;;  %v653_v28 = vmax.f32 %v651_v13, 0.0  ;;  %v1123_v30 = vld [vmem:[%s1834_s1 + $0x26] ss:$8 sm:$0x3] }
  0xc3   : >> { %v567_v22 = vadd.f32 %v563_v5, %v560_v7  ;;  %v568_v24 = vadd.f32 %v564_v6, %v560_v7  ;;  %v668_v6 = vperm.slane %v1117_v59, 0  ;;  %v669_v7 = vperm.slane %v1117_v59, 1  ;;  %v749_v59 = vpop.permute.xlu0 %748 }
  0xc4   : >> { %v554_v60 = vadd.f32 %v552_v41, %v533_v45  ;;  %v555_v61 = vadd.f32 %v553_v42, %v534_v46  ;;  %v654_v29 = vmax.f32 %v652_v14, 0.0  ;;  %v1125_v41 = vld [vmem:[%s1834_s1 + $0x27] ss:$8 sm:$0x3]  ;;  %v677_v42 = vstv %s1713_s25  ;;  %s1733_s25 = sld [smem:[#allocation3 + $0x17]] }
  0xc5   : >> { %v569_v38 = vmax.f32 %v567_v22, 0.0  ;;  %v570_v39 = vmax.f32 %v568_v24, 0.0  ;;  %v1121_v22 = vld [vmem:[%s1834_s1 + $0x25] ss:$8 sm:$0x3]  ;;  %v636_v24 = vmul.f32 %v635_v52, %v632_v9  ;;  %v732_v35 = vperm.slane %v1123_v30, 1 }
  0xc6   : >> { %v710_v36 = vperm.slane %v1121_v22, 0  ;;  %v695_v40 = vmax.f32 %v693_v33, 0.0  ;;  %v696_v48 = vmax.f32 %v694_v34, 0.0  ;;  %v753_v58 = vperm.slane %v1125_v41, 1 }
  0xc7   : >> { %v573_v50 = vmul.f32 %v572_v37, %v569_v38  ;;  %v574_v51 = vmul.f32 %v572_v37, %v570_v39  ;;  %v711_v39 = vperm.slane %v1121_v22, 1  ;;  %v1131_v34 = vld [vmem:[%s1834_s1 + $0x32] ss:$8 sm:$0x3] }
  0xc8   : >> { %v757_v52 = vadd.f32 %v753_v58, %v749_v59 }
  0xc9   : >> { %v575_v62 = vadd.f32 %v573_v50, %v554_v60  ;;  %v576_v5 = vadd.f32 %v574_v51, %v555_v61  ;;  %v752_v50 = vperm.slane %v1125_v41, 0  ;;  %v782_v41 = vstv %s1742_s12  ;;  %s1763_s12 = sld [smem:[#allocation3 + $0x1c]] }
  0xca   : >> { %v761_v22 = vstv %s1733_s25  ;;  %s1757_s25 = sld [smem:[#allocation3 + $0x1b]] }
  0xcb   : >> { %v602_v43 = vpop.permute.xlu1 %601  ;;  %v596_v18 = vadd.f32 %v594_v1, %v575_v62  ;;  %v597_v19 = vadd.f32 %v595_v2, %v576_v5  ;;  %v1127_v1 = vld [vmem:[%s1834_s1 + $0x30] ss:$8 sm:$0x3] }
  0xcc   : >> { %v609_v47 = vadd.f32 %v605_v31, %v602_v43  ;;  %v610_v23 = vadd.f32 %v606_v32, %v602_v43  ;;  %v728_v31 = vpop.permute.xlu2 %727  ;;  %v656_v32 = vstv %s1707_s27  ;;  %v731_v43 = vperm.slane %v1123_v30, 0  ;;  %s1731_s27 = sld [smem:[#allocation3 + $0x16]] }
  0xcd   : >> { %v657_v46 = vmul.f32 %v656_v32, %v653_v28  ;;  %v736_v57 = vadd.f32 %v732_v35, %v728_v31  ;;  %v773_v9 = vperm.slane %v1127_v1, 0  ;;  %v774_v10 = vperm.slane %v1127_v1, 1 }
  0xce   : >> { %v611_v63 = vmax.f32 %v609_v47, 0.0  ;;  %v612_v0 = vmax.f32 %v610_v23, 0.0  ;;  %v658_v47 = vmul.f32 %v656_v32, %v654_v29  ;;  %v698_v23 = vstv %s1715_s6  ;;  %s1773_s6 = sld [smem:[#allocation3 + $0x1d]] }
  0xcf   : >> { %v735_v56 = vadd.f32 %v731_v43, %v728_v31  ;;  %v699_v2 = vmul.f32 %v698_v23, %v695_v40  ;;  %v700_v5 = vmul.f32 %v698_v23, %v696_v48  ;;  %v738_v14 = vmax.f32 %v736_v57, 0.0  ;;  %v1133_v31 = vld [vmem:[%s1834_s1 + $0x33] ss:$8 sm:$0x3] }
  0xd0   : >> { %v615_v11 = vmul.f32 %v614_v3, %v611_v63  ;;  %v616_v12 = vmul.f32 %v614_v3, %v612_v0  ;;  %v719_v3 = vstv %s1724_s13  ;;  %s1745_s13 = sld [smem:[#allocation3 + $0x19]]  ;;  %v837_v43 = vperm.slane %v1133_v31, 1  ;;  %v1135_v23 = vld [vmem:[%s1834_s1 + $0x34] ss:$8 sm:$0x3] }
  0xd1   : >> { %v737_v13 = vmax.f32 %v735_v56, 0.0  ;;  %v857_v56 = vperm.slane %v1135_v23, 0  ;;  %v858_v57 = vperm.slane %v1135_v23, 1 }
  0xd2   : >> { %v617_v26 = vadd.f32 %v615_v11, %v596_v18  ;;  %v618_v27 = vadd.f32 %v616_v12, %v597_v19 }
  0xd4   : >> { %v665_v15 = vpop.permute.xlu1 %664  ;;  %v638_v44 = vadd.f32 %v636_v24, %v617_v26  ;;  %v639_v45 = vadd.f32 %v637_v25, %v618_v27  ;;  %v791_v8 = vpop.permute.xlu2 %790  ;;  %v759_v24 = vmax.f32 %v757_v52, 0.0 }
  0xd5   : >> { %v672_v20 = vadd.f32 %v668_v6, %v665_v15  ;;  %v673_v21 = vadd.f32 %v669_v7, %v665_v15  ;;  %v756_v6 = vadd.f32 %v752_v50, %v749_v59  ;;  %v1129_v7 = vld [vmem:[%s1834_s1 + $0x31] ss:$8 sm:$0x3]  ;;  %v740_v15 = vstv %s1731_s27 }
  0xd6   : >> { %v659_v60 = vadd.f32 %v657_v46, %v638_v44  ;;  %v660_v61 = vadd.f32 %v658_v47, %v639_v45  ;;  %v794_v16 = vperm.slane %v1129_v7, 0  ;;  %v795_v17 = vperm.slane %v1129_v7, 1  ;;  %v1139_v7 = vld [vmem:[%s1834_s1 + $0x36] ss:$8 sm:$0x3] }
  0xd7   : >> { %v674_v37 = vmax.f32 %v672_v20, 0.0  ;;  %v675_v38 = vmax.f32 %v673_v21, 0.0  ;;  %v758_v20 = vmax.f32 %v756_v6, 0.0  ;;  %v741_v29 = vmul.f32 %v740_v15, %v737_v13 }
  0xd8   : >> { %v742_v30 = vmul.f32 %v740_v15, %v738_v14  ;;  %v798_v32 = vadd.f32 %v794_v16, %v791_v8  ;;  %v799_v33 = vadd.f32 %v795_v17, %v791_v8  ;;  %v815_v45 = vperm.slane %v1131_v34, 0 }
  0xd9   : >> { %v678_v51 = vmul.f32 %v677_v42, %v674_v37  ;;  %v679_v53 = vmul.f32 %v677_v42, %v675_v38  ;;  %v836_v42 = vperm.slane %v1133_v31, 0  ;;  %v816_v46 = vperm.slane %v1131_v34, 1 }
  0xda   : >> { %v800_v40 = vmax.f32 %v798_v32, 0.0  ;;  %v801_v48 = vmax.f32 %v799_v33, 0.0  ;;  %v845_v8 = vstv %s1757_s25  ;;  %v899_v16 = vperm.slane %v1139_v7, 0  ;;  %s1778_s25 = sld [smem:[#allocation3 + $0x1f]] }
  0xdb   : >> { %v680_v4 = vadd.f32 %v678_v51, %v659_v60  ;;  %v681_v62 = vadd.f32 %v679_v53, %v660_v61  ;;  %v803_v51 = vstv %s1745_s13  ;;  %v900_v17 = vperm.slane %v1139_v7, 1 }
  0xdc   : >> { %v833_v47 = vpop.permute.xlu2 %832  ;;  %v805_v1 = vmul.f32 %v803_v51, %v801_v48  ;;  %v887_v34 = vstv %s1773_s6 }
  0xdd   : >> { %v707_v49 = vpop.permute.xlu1 %706  ;;  %v701_v18 = vadd.f32 %v699_v2, %v680_v4  ;;  %v702_v19 = vadd.f32 %v700_v5, %v681_v62  ;;  %v824_v2 = vstv %s1754_s5  ;;  %s1775_s5 = sld [smem:[#allocation3 + $0x1e]] }
  0xde   : >> { %v714_v54 = vadd.f32 %v710_v36, %v707_v49  ;;  %v715_v55 = vadd.f32 %v711_v39, %v707_v49  ;;  %v762_v36 = vmul.f32 %v761_v22, %v758_v20  ;;  %v763_v39 = vmul.f32 %v761_v22, %v759_v24 }
  0xe0   : >> { %v716_v63 = vmax.f32 %v714_v54, 0.0  ;;  %v717_v0 = vmax.f32 %v715_v55, 0.0  ;;  %v840_v54 = vadd.f32 %v836_v42, %v833_v47  ;;  %v841_v55 = vadd.f32 %v837_v43, %v833_v47 }
  0xe2   : >> { %v720_v11 = vmul.f32 %v719_v3, %v716_v63  ;;  %v721_v12 = vmul.f32 %v719_v3, %v717_v0  ;;  %v854_v63 = vpop.permute.xlu0 %853  ;;  %v804_v0 = vmul.f32 %v803_v51, %v800_v40  ;;  %v1137_v3 = vld [vmem:[%s1834_s1 + $0x35] ss:$8 sm:$0x3]  ;;  %v843_v13 = vmax.f32 %v841_v55, 0.0 }
  0xe3   : >> { %v861_v52 = vadd.f32 %v857_v56, %v854_v63  ;;  %v878_v14 = vperm.slane %v1137_v3, 0  ;;  %v879_v15 = vperm.slane %v1137_v3, 1 }
  0xe4   : >> { %v722_v27 = vadd.f32 %v720_v11, %v701_v18  ;;  %v723_v28 = vadd.f32 %v721_v12, %v702_v19  ;;  %v842_v12 = vmax.f32 %v840_v54, 0.0  ;;  %v896_v20 = vpop.permute.xlu2 %895 }
  0xe5   : >> { %v863_v22 = vmax.f32 %v861_v52, 0.0  ;;  %v903_v32 = vadd.f32 %v899_v16, %v896_v20  ;;  %v904_v33 = vadd.f32 %v900_v17, %v896_v20 }
  0xe6   : >> { %v770_v21 = vpop.permute.xlu1 %769  ;;  %v743_v35 = vadd.f32 %v741_v29, %v722_v27  ;;  %v744_v44 = vadd.f32 %v742_v30, %v723_v28  ;;  %v846_v27 = vmul.f32 %v845_v8, %v842_v12  ;;  %v847_v28 = vmul.f32 %v845_v8, %v843_v13 }
  0xe7   : >> { %v777_v25 = vadd.f32 %v773_v9, %v770_v21  ;;  %v778_v26 = vadd.f32 %v774_v10, %v770_v21  ;;  %v862_v9 = vadd.f32 %v858_v57, %v854_v63  ;;  %v866_v21 = vstv %s1763_s12  ;;  %s934_s12 = sshra.s32 %s1080_s23, 3  ;;  %s1153_s23 = sshll.u32 (%p254_p1), %s1388_s20, 8 }
  0xe8   : >> { %v764_v58 = vadd.f32 %v762_v36, %v743_v35  ;;  %v765_v59 = vadd.f32 %v763_v39, %v744_v44  ;;  %v867_v42 = vmul.f32 %v866_v21, %v863_v22  ;;  %v908_v35 = vstv %s1775_s5  ;;  %s1151_s30 = sshll.u32 %s934_s12, 4  ;;  %s956_s6 = scalar_lea.hbm (%p254_p1), %s1837_s4, %s1153_s23 }
  0xe9   : >> { %v779_v37 = vmax.f32 %v777_v25, 0.0  ;;  %v780_v38 = vmax.f32 %v778_v26, 0.0  ;;  %v864_v24 = vmax.f32 %v862_v9, 0.0  ;;  %v905_v44 = vmax.f32 %v903_v32, 0.0  ;;  %s938_s14 = scalar_lea.vmem %s236_s16, %s1151_s30 [#allocation6]  ;;  %s957_s5 = sshll.u32 (%p254_p1), %s236_s16, 4  ;;  %s958_s5 = int_to_ptr.vmem [resolvable:$true] %s957_s5 }
  0xeb   : >> { %v783_v49 = vmul.f32 %v782_v41, %v779_v37  ;;  %v784_v50 = vmul.f32 %v782_v41, %v780_v38  ;;  %v1141_v38 = vld [vmem:[%s1834_s1 + $0x37] ss:$8 sm:$0x3]  ;;  %v868_v43 = vmul.f32 %v866_v21, %v864_v24 }
  0xec   : >> { %v920_v23 = vperm.slane %v1141_v38, 0  ;;  %v921_v40 = vperm.slane %v1141_v38, 1 }
  0xed   : >> { %v785_v4 = vadd.f32 %v783_v49, %v764_v58  ;;  %v786_v62 = vadd.f32 %v784_v50, %v765_v59  ;;  %v909_v50 = vmul.f32 %v908_v35, %v905_v44  ;;  %v929_v58 = vstv %s1778_s25  ;;  %s959_s25 = sshll.u32 (%p254_p1), %s956_s6, 4  ;;  %s960_s25 = int_to_ptr.hbm [resolvable:$true] %s959_s25 }
  0xee   : > { %s1324_s9 = sshra.s32 (%p254_p1), %s960_s25, 4  ;;  %s1325_s9 = int_to_ptr.hbm [resolvable:$true] %s1324_s9 }
  0xef   : >> { %v812_v53 = vpop.permute.xlu1 %811  ;;  %v806_v18 = vadd.f32 %v804_v0, %v785_v4  ;;  %v807_v19 = vadd.f32 %v805_v1, %v786_v62  ;;  %s1326_s3 = scalar_lea.hbm (%p254_p1), %s1325_s9, 256  ;;  %p1331_p6 = scmp.lt.s32.totalorder (%p254_p1), %s1325_s9, %s1837_s4 }
  0xf0   : >> { %v819_v60 = vadd.f32 %v815_v45, %v812_v53  ;;  %v820_v61 = vadd.f32 %v816_v46, %v812_v53  ;;  %v906_v45 = vmax.f32 %v904_v33, 0.0  ;;  %p1327_p2 = scmp.ne.s32.totalorder (%p254_p1), %s1325_s9, %s1326_s3  ;;  %p1332_p7 = scmp.lt.s32.totalorder (%p254_p1), %s1330_s15, %s1326_s3 }
  0xf2   : >> { %v821_v5 = vmax.f32 %v819_v60, 0.0  ;;  %v822_v6 = vmax.f32 %v820_v61, 0.0  ;;  %v910_v51 = vmul.f32 %v908_v35, %v906_v45  ;;  %p1328_p3 = pnand (%p254_p1), %p1327_p2, %p1505_p4  ;;  %p1333_p9 = por (%p254_p1), %p1332_p7, %p1331_p6 }
  0xf4   : >> { %v825_v10 = vmul.f32 %v824_v2, %v821_v5  ;;  %v826_v11 = vmul.f32 %v824_v2, %v822_v6  ;;  %p1329_p5 = pneg (%p254_p1), %p1328_p3 }
  0xf6   : >> { %v827_v25 = vadd.f32 %v825_v10, %v806_v18  ;;  %v828_v26 = vadd.f32 %v826_v11, %v807_v19  ;;  %p1334_p10 = pnand (%p254_p1), %p1333_p9, %p1329_p5 }
  0xf8   : >> { %v875_v29 = vpop.permute.xlu1 %874  ;;  %v848_v39 = vadd.f32 %v846_v27, %v827_v25  ;;  %v849_v41 = vadd.f32 %v847_v28, %v828_v26 }
  0xf9   : >> { %v882_v30 = vadd.f32 %v878_v14, %v875_v29  ;;  %v883_v31 = vadd.f32 %v879_v15, %v875_v29 }
  0xfa   : >> { %v869_v48 = vadd.f32 %v867_v42, %v848_v39  ;;  %v870_v49 = vadd.f32 %v868_v43, %v849_v41 }
  0xfb   : >> { %v884_v36 = vmax.f32 %v882_v30, 0.0  ;;  %v885_v37 = vmax.f32 %v883_v31, 0.0 }
  0xfd   : >> { %v888_v46 = vmul.f32 %v887_v34, %v884_v36  ;;  %v889_v47 = vmul.f32 %v887_v34, %v885_v37 }
  0xff   : >> { %v890_v54 = vadd.f32 %v888_v46, %v869_v48  ;;  %v891_v55 = vadd.f32 %v889_v47, %v870_v49 }
 0x101   : >> { %v917_v53 = vpop.permute.xlu1 %916  ;;  %v911_v61 = vadd.f32 %v909_v50, %v890_v54  ;;  %v912_v63 = vadd.f32 %v910_v51, %v891_v55 }
 0x102   : >> { %v924_v56 = vadd.f32 %v920_v23, %v917_v53  ;;  %v925_v57 = vadd.f32 %v921_v40, %v917_v53 }
 0x104   : >> { %v926_v59 = vmax.f32 %v924_v56, 0.0  ;;  %v927_v60 = vmax.f32 %v925_v57, 0.0 }
 0x106   : >> { %v930_v0 = vmul.f32 %v929_v58, %v926_v59  ;;  %v931_v1 = vmul.f32 %v929_v58, %v927_v60 }
 0x107   : > { %256 = sbr.rel (!%p254_p1) target bundleno = 32 (0x20), region = 119 }
 0x108   : >> { %v932_v2 = vadd.f32 %v930_v0, %v911_v61  ;;  %v933_v3 = vadd.f32 %v931_v1, %v912_v63 }
 0x10a   : >> { %939 = vst [vmem:[%s938_s14] sm:$0xff] %v932_v2 }
 0x10b   : >> { %940 = vst [vmem:[%s938_s14 + $0x8] sm:$0xff] %v933_v3 }
 0x10c   : > { %1337 = shalt.err (!%p1334_p10)
}
 0x10d   : > { %s1435_s8 = smov 256   ;;  %s1436_s10 = smov 16  }
 0x10e   : > { %1158 = dma.vmem_to_hbm [thread:$0]  (%p1505_p4), %s958_s5, 4096, %s960_s25, %s942_s7, %s1435_s8, %s1435_s8, %s1436_s10  }
 0x10f PF: > { %p1170_p11 = scmp.ge.s32.totalorder %s1396_s22, 2  ;;  %s974_s16 = sand.u32 1, %s1376_s17  }
 0x110   : > { %s975_s14 = scalar_lea.sflag [#allocation4], %s974_s16 }
 0x111   : > { %p1165_p12 = pnand %p1170_p11, %p1512_p8 }
 0x113   : > { %p1166_p13 = pneg %p1165_p12 }
 0x115   : > { %1371 = dma.done.wait (%p1166_p13), %s975_s14, 4096  }
 0x116   : > { %1373 = vsyncadd (%p1166_p13), %s975_s14, 4294963200  ;;  %s19_s22 = sadd.s32 1, %s1396_s22   ;;  %s1840_s17 = smov %s1380_s18 }
 0x117   : > { %p16_p0 = scmp.ge.s32.totalorder %s19_s22, 4   ;;  %s1841_s18 = smov %s1384_s19 }
 0x118   : > { %s1842_s19 = smov %s1518_s29  ;;  %s1843_s20 = smov %s1392_s21 }
 0x119   : > { %s1844_s21 = smov %s1846_s24  ;;  %18 = sbr.rel (!%p16_p0) target bundleno = 7 (0x7), region = 130 }
 0x11e   :  { %981 = vsyncpa [#allocation4], 1 }
 0x11f   :  { %983 = vsyncpa [#allocation4 + $0x1], 1 }
 0x120   :  { %984 = vsyncpa [#allocation5], 1 }
 0x121   :  { %986 = vsyncpa [#allocation5 + $0x1], 1 }

</bundles_post_ra>
